<compile_context>
chip_gen: v6e
topology: v6e:2x2x1
jax: 0.10.0
libtpu: 0.0.40
codegen_flags: <defaults>
</compile_context>

<pallas_src>
import jax
import jax.numpy as jnp
import numpy as np
from jax.experimental import pallas as pl
from jax.experimental.pallas import tpu as pltpu

KS = 7                   # AttentionGate conv kernel size
PAD = (KS - 1) // 2      # = 3
NB = 512                 # ClassBlock num_bottleneck
BN_EPS = 1e-5


# ---------------------------------------------------------------------------
# In-kernel helper: one AttentionGate branch fused with MCCG's spatial mean.
# ---------------------------------------------------------------------------
def _gate_branch(z_max, z_mean, band_ref, bias):
    """ZPool -> 7x7 conv (MXU banded matmul + sublane shifts) -> sigmoid -> gated mean.

    z_max / z_mean : (BB, S, C) f32, channel axis C on lanes; S is the spatial
                     axis surviving this branch's ZPool (W for 'cw', H for 'hc').
    band_ref       : (2, C, KS*C) bf16 VMEM ref.  band_ref[ch][c_in, r*C + c_out]
                     = conv_weight[ch, r, c_in - c_out + PAD] * bn_scale, zero
                     outside the +/-PAD band -> the C-direction taps and halo
                     are handled entirely by the MXU matmul.
    bias           : folded BatchNorm2d bias (scalar, read from SMEM).
    Returns (BB, C) f32: mean over the two reduced spatial axes of x * sigmoid(conv).
    """
    BB, S, C = z_max.shape
    zmax2 = z_max.reshape(BB * S, C).astype(jnp.bfloat16)
    zmean2 = z_mean.reshape(BB * S, C).astype(jnp.bfloat16)
    g = (jnp.dot(zmax2, band_ref[0], preferred_element_type=jnp.float32)
         + jnp.dot(zmean2, band_ref[1], preferred_element_type=jnp.float32))
    g = g.reshape(BB, S, KS * C)                    # lane block r holds row-tap r

    sub = jax.lax.broadcasted_iota(jnp.int32, (1, S, 1), 1)
    conv = jnp.zeros((BB, S, C), jnp.float32)
    for r in range(KS):                             # combine the 7 row (S-axis) taps
        d = r - PAD
        g_r = g[:, :, r * C:(r + 1) * C]            # aligned static lane slice
        if d == 0:
            conv = conv + g_r
        else:
            shifted = pltpu.roll(g_r, shift=(-d) % S, axis=1)   # sublane roll (XLU)
            mask = (sub < S - d) if d > 0 else (sub >= -d)
            conv = conv + jnp.where(mask, shifted, 0.0)

    scale = jax.nn.sigmoid(conv + bias)
    # mean_{h,w}(x * scale) == (1/S) * sum_S (scale * mean_over_other_axis(x))
    return jnp.sum(scale * z_mean, axis=1) * (1.0 / S)          # (BB, C)


# ---------------------------------------------------------------------------
# Fused kernel: TripletAttention (2 gates) + spatial means + 3 ClassBlock heads.
# ---------------------------------------------------------------------------
def _mccg_kernel(bias_ref,   # SMEM (2,) f32 : folded gate BN biases (scalar prefetch)
                 t_ref,      # VMEM (BB, C) f32
                 x_ref,      # VMEM (BB, H, W, C) f32  (lane-dense NHWC block)
                 bcw_ref,    # VMEM (2, C, KS*C) bf16 : cw-branch banded conv weights
                 bhc_ref,    # VMEM (2, C, KS*C) bf16 : hc-branch banded conv weights
                 wc_ref,     # VMEM (3, C, NB) bf16  : classifier weights, BN scale folded
                 cs_ref,     # VMEM (3, 1, NB) f32   : classifier folded BN shift
                 o_ref):     # VMEM (3, BB, NB) f32  : [convnext, p1, p2]
    x = x_ref[...]                                  # (BB, H, W, C)
    BB, H, W, C = x.shape

    # ZPool for both branches -- dense reductions, no transposes.
    zmax_cw = jnp.max(x, axis=1)                    # (BB, W, C)
    zmean_cw = jnp.sum(x, axis=1) * (1.0 / H)
    zmax_hc = jnp.max(x, axis=2)                    # (BB, H, C)
    zmean_hc = jnp.sum(x, axis=2) * (1.0 / W)

    g1 = _gate_branch(zmax_cw, zmean_cw, bcw_ref, bias_ref[0])   # (BB, C)
    g2 = _gate_branch(zmax_hc, zmean_hc, bhc_ref, bias_ref[1])   # (BB, C)

    def head(feat, g):
        y = jnp.dot(feat.astype(jnp.bfloat16), wc_ref[g],
                    preferred_element_type=jnp.float32)          # MXU, (BB, NB) f32
        return y + cs_ref[g]

    o_ref[0] = head(t_ref[...], 0)   # classifier1 on the global feature
    o_ref[1] = head(g1, 1)           # classifier_mcb1 (cw branch)
    o_ref[2] = head(g2, 2)           # classifier_mcb2 (hc branch)


# ---------------------------------------------------------------------------
# Host-side weight prep helpers
# ---------------------------------------------------------------------------
def _banded_conv_matrix(wk, C):
    """wk: (2, KS, KS) f32, wk[ch, r, dc] = conv weight for row(S)-tap r and
    lane(C)-tap dc, BN2d scale already folded.  Returns (2, C, KS*C) bf16 with
    out[ch, c_in, r*C + c_out] = wk[ch, r, c_in - c_out + PAD] (0 outside band)."""
    ci = np.arange(C)[:, None]
    co = np.arange(C)[None, :]
    dc = ci - co + PAD
    valid = (dc >= 0) & (dc < KS)                               # (C, C)
    dci = np.clip(dc, 0, KS - 1)
    band = jnp.where(valid[None, None], wk[:, :, dci], 0.0)     # (2, KS, C, C)
    band = jnp.transpose(band, (0, 2, 1, 3)).reshape(2, C, KS * C)
    return band.astype(jnp.bfloat16)


def _pick_batch_block(B, H, W, C, x_budget_bytes=4 << 20):
    """Largest batch block that (a) keeps the double-buffered x block within
    ~x_budget_bytes (v7x 64 MiB VMEM safe), (b) is a multiple of 8 so the
    t/out blocks keep legal sublane tiling when grid > 1, and (c) leaves
    grid >= 2 when the batch allows it (v7x two-TensorCore megacore)."""
    if B <= 8:
        return B
    row_bytes = H * W * C * 4
    cap = max(8, min(128, (x_budget_bytes // max(1, 2 * row_bytes)) // 8 * 8))
    bb = cap
    while bb > 8 and bb * 2 > B:     # keep grid >= 2, stepping by 8
        bb -= 8
    return max(8, bb)


# ---------------------------------------------------------------------------
# MCCG eval-mode forward (single pallas_call)
# ---------------------------------------------------------------------------
def mccg_forward(t, x, P, *, batch_block=None):
    B, C = t.shape
    assert x.shape[0] == B and x.shape[1] == C, (t.shape, x.shape)
    _, _, H, W = x.shape

    # --- fold BatchNorms & pack weights (tiny host-side prep) --------------
    # Gate conv weights arranged as [ch, row(S)-tap, lane(C)-tap], BN folded:
    #   'cw' branch: conv spatial dims are (C, W) -> row tap = kw, lane tap = kc.
    #   'hc' branch: conv spatial dims are (H, C) -> row tap = kh, lane tap = kc.
    wk_cw = jnp.transpose(P["cw_w"][0].astype(jnp.float32), (0, 2, 1)) * P["cw_bn_s"]
    wk_hc = P["hc_w"][0].astype(jnp.float32) * P["hc_bn_s"]
    band_cw = _banded_conv_matrix(wk_cw, C)                     # (2, C, KS*C) bf16
    band_hc = _banded_conv_matrix(wk_hc, C)
    gate_bias = jnp.stack([jnp.asarray(P["cw_bn_b"], jnp.float32).reshape(()),
                           jnp.asarray(P["hc_bn_b"], jnp.float32).reshape(())])

    # ClassBlock: fold BN1d scale into the Linear weights (bf16 for the MXU).
    wc = jnp.stack([P["cls1_w"] * P["cls1_s"][None, :],
                    P["mcb1_w"] * P["mcb1_s"][None, :],
                    P["mcb2_w"] * P["mcb2_s"][None, :]], 0).astype(jnp.bfloat16)
    cshift = jnp.stack([P["cls1_t"], P["mcb1_t"], P["mcb2_t"]], 0)[:, None, :]

    # --- lane-dense x + batch blocking --------------------------------------
    x_l = jnp.transpose(x, (0, 2, 3, 1))            # NCHW -> NHWC, once, XLA side
    BB = batch_block if batch_block is not None else _pick_batch_block(B, H, W, C)
    n_blk = -(-B // BB)
    B_pad = n_blk * BB
    if B_pad != B:
        t = jnp.pad(t, ((0, B_pad - B), (0, 0)))
        x_l = jnp.pad(x_l, ((0, B_pad - B), (0, 0), (0, 0), (0, 0)))

    grid_spec = pltpu.PrefetchScalarGridSpec(
        num_scalar_prefetch=1,
        grid=(n_blk,),
        in_specs=[
            pl.BlockSpec((BB, C), lambda i, _b: (i, 0)),
            pl.BlockSpec((BB, H, W, C), lambda i, _b: (i, 0, 0, 0)),
            # TODO(synk): if the x DMA ever becomes exposed after the MXU
            # rewrite, add pipeline_mode=pl.Buffered(3) on the x spec only.
            pl.BlockSpec((2, C, KS * C), lambda i, _b: (0, 0, 0)),
            pl.BlockSpec((2, C, KS * C), lambda i, _b: (0, 0, 0)),
            pl.BlockSpec((3, C, NB), lambda i, _b: (0, 0, 0)),
            pl.BlockSpec((3, 1, NB), lambda i, _b: (0, 0, 0)),
        ],
        out_specs=pl.BlockSpec((3, BB, NB), lambda i, _b: (0, i, 0)),
    )
    out = pl.pallas_call(
        _mccg_kernel,
        out_shape=jax.ShapeDtypeStruct((3, B_pad, NB), jnp.float32),
        grid_spec=grid_spec,
        compiler_params=pltpu.CompilerParams(
            dimension_semantics=("parallel",),
            vmem_limit_bytes=32 << 20,
        ),
    )(gate_bias, t, x_l, band_cw, band_hc, wc, cshift)          # (3, B_pad, NB)

    convnext, p1, p2 = out[0, :B], out[1, :B], out[2, :B]
    y = jnp.stack([p1, p2], axis=2)                             # (B, NB, 2)
    return jnp.concatenate([y, convnext[:, :, None]], axis=2)   # (B, NB, block+1)


# ---------------------------------------------------------------------------
# Deterministic parameter init (mirrors the shapes in MCCG.__init__, eval mode)
# ---------------------------------------------------------------------------
def init_params(key, C):
    ks = jax.random.split(key, 10)

    def conv_gate(kw, kbn):
        # BasicConv(2, 1, 7): kaiming fan_in, no bias; BatchNorm2d(1) eval -> fold.
        w = jax.random.normal(kw, (1, 2, KS, KS), jnp.float32) * np.sqrt(2.0 / (2 * KS * KS))
        g, b, rm, rv = jax.random.split(kbn, 4)
        gamma = 1.0 + 0.2 * jax.random.normal(g, (), jnp.float32)
        beta = 0.1 * jax.random.normal(b, (), jnp.float32)
        rmean = 0.1 * jax.random.normal(rm, (), jnp.float32)
        rvar = 0.5 + jax.random.uniform(rv, (), jnp.float32)
        s = gamma / jnp.sqrt(rvar + BN_EPS)
        return w, s, beta - rmean * s

    def classblock(kw, kbn):
        # Linear(C, 512) kaiming fan_out + bias; BatchNorm1d(512) eval -> fold.
        w = jax.random.normal(kw, (NB, C), jnp.float32) * np.sqrt(2.0 / NB)
        kb, kg, kbe, krm, krv = jax.random.split(kbn, 5)
        bias = 0.02 * jax.random.normal(kb, (NB,), jnp.float32)
        gamma = 1.0 + 0.2 * jax.random.normal(kg, (NB,), jnp.float32)
        beta = 0.1 * jax.random.normal(kbe, (NB,), jnp.float32)
        rm = 0.1 * jax.random.normal(krm, (NB,), jnp.float32)
        rv = 0.5 + jax.random.uniform(krv, (NB,), jnp.float32)
        s = gamma / jnp.sqrt(rv + BN_EPS)
        return w.T, s, beta + (bias - rm) * s              # (C, NB), (NB,), (NB,)

    P = {}
    P["cw_w"], P["cw_bn_s"], P["cw_bn_b"] = conv_gate(ks[0], ks[1])
    P["hc_w"], P["hc_bn_s"], P["hc_bn_b"] = conv_gate(ks[2], ks[3])
    P["cls1_w"], P["cls1_s"], P["cls1_t"] = classblock(ks[4], ks[5])
    P["mcb1_w"], P["mcb1_s"], P["mcb1_t"] = classblock(ks[6], ks[7])
    P["mcb2_w"], P["mcb2_s"], P["mcb2_t"] = classblock(ks[8], ks[9])
    return P


# ---------------------------------------------------------------------------
# Pure-JAX reference (numerical sanity check)
# ---------------------------------------------------------------------------
def ref_forward(t, x, P):
    def gate(xp, w, bn_s, bn_b):
        zp = jnp.concatenate([jnp.max(xp, axis=1, keepdims=True),
                              jnp.mean(xp, axis=1, keepdims=True)], axis=1)
        conv = jax.lax.conv_general_dilated(
            zp, w, window_strides=(1, 1), padding=((PAD, PAD), (PAD, PAD)),
            dimension_numbers=("NCHW", "OIHW", "NCHW"),
            precision=jax.lax.Precision.HIGHEST)
        conv = conv * bn_s + bn_b
        return xp * jax.nn.sigmoid(conv)

    xo11 = jnp.transpose(gate(jnp.transpose(x, (0, 2, 1, 3)),
                              P["cw_w"], P["cw_bn_s"], P["cw_bn_b"]), (0, 2, 1, 3))
    xo21 = jnp.transpose(gate(jnp.transpose(x, (0, 3, 2, 1)),
                              P["hc_w"], P["hc_bn_s"], P["hc_bn_b"]), (0, 3, 2, 1))
    tri = [xo11.mean(axis=(-2, -1)), xo21.mean(axis=(-2, -1))]   # each (B, C)

    def cb(f, w, s, b):
        return (f @ w) * s + b

    convnext = cb(t, P["cls1_w"], P["cls1_s"], P["cls1_t"])
    p1 = cb(tri[0], P["mcb1_w"], P["mcb1_s"], P["mcb1_t"])
    p2 = cb(tri[1], P["mcb2_w"], P["mcb2_s"], P["mcb2_t"])
    y = jnp.stack([p1, p2], axis=2)
    return jnp.concatenate([y, convnext[:, :, None]], axis=2)


if __name__ == "__main__":
    # Small shapes: batch=2, in_channels=128 (one full lane width), 8x8 map.
    B, C, H, W = 2, 128, 8, 8
    key = jax.random.PRNGKey(0)
    kt, kx, kp = jax.random.split(key, 3)
    t = jax.random.normal(kt, (B, C), jnp.float32)
    x = jax.random.normal(kx, (B, C, H, W), jnp.float32)
    P = init_params(kp, C)

    y = jax.jit(mccg_forward)(t, x, P)
    y = jax.block_until_ready(y)
    assert y.shape == (B, NB, 3), y.shape

    y_ref = ref_forward(t, x, P)
    np.testing.assert_allclose(np.asarray(y), np.asarray(y_ref), rtol=3e-2, atol=3e-2)
    print("KERNEL_OK")
</pallas_src>

<mosaic_0001>
module attributes {stable_mosaic.version = 11 : i64} {
  func.func @_mccg_kernel(%arg0: i32, %arg1: memref<2xf32, #tpu.memory_space<smem>>, %arg2: memref<2x128xf32, #tpu.memory_space<vmem>>, %arg3: memref<2x8x8x128xf32, #tpu.memory_space<vmem>>, %arg4: memref<2x128x896xbf16, #tpu.memory_space<vmem>>, %arg5: memref<2x128x896xbf16, #tpu.memory_space<vmem>>, %arg6: memref<3x128x512xbf16, #tpu.memory_space<vmem>>, %arg7: memref<3x1x512xf32, #tpu.memory_space<vmem>>, %arg8: memref<3x2x512xf32, #tpu.memory_space<vmem>>) attributes {dimension_semantics = [#tpu.dimension_semantics<parallel>], iteration_bounds = array<i64: 1>, scalar_prefetch = 1 : i64, scratch_operands = 0 : i64, tpu.core_type = #tpu.core_type<tc>, window_params = [{transform_indices = @transform_0, window_bounds = array<i64: 2, 128>}, {transform_indices = @transform_1, window_bounds = array<i64: 2, 8, 8, 128>}, {pipeline_mode = #tpu.pipeline_mode<synchronous>, transform_indices = @transform_2, window_bounds = array<i64: 2, 128, 896>}, {pipeline_mode = #tpu.pipeline_mode<synchronous>, transform_indices = @transform_3, window_bounds = array<i64: 2, 128, 896>}, {pipeline_mode = #tpu.pipeline_mode<synchronous>, transform_indices = @transform_4, window_bounds = array<i64: 3, 128, 512>}, {pipeline_mode = #tpu.pipeline_mode<synchronous>, transform_indices = @transform_5, window_bounds = array<i64: 3, 1, 512>}, {transform_indices = @transform_6, window_bounds = array<i64: 3, 2, 512>}]} {
    %c0 = arith.constant 0 : index
    %c0_0 = arith.constant 0 : index
    %c0_1 = arith.constant 0 : index
    %c0_2 = arith.constant 0 : index
    %0 = vector.load %arg3[%c0, %c0_0, %c0_1, %c0_2] : memref<2x8x8x128xf32, #tpu.memory_space<vmem>>, vector<2x8x8x128xf32>
    %cst = arith.constant dense<0xFF800000> : vector<2x8x128xf32>
    %1 = vector.multi_reduction <maximumf>, %0, %cst [1] : vector<2x8x8x128xf32> to vector<2x8x128xf32>
    %cst_3 = arith.constant dense<0.000000e+00> : vector<2x8x128xf32>
    %2 = vector.multi_reduction <add>, %0, %cst_3 [1] : vector<2x8x8x128xf32> to vector<2x8x128xf32>
    %cst_4 = arith.constant 1.250000e-01 : f32
    %3 = vector.broadcast %cst_4 : f32 to vector<2x8x128xf32>
    %4 = arith.mulf %2, %3 : vector<2x8x128xf32>
    %cst_5 = arith.constant dense<0xFF800000> : vector<2x8x128xf32>
    %5 = vector.multi_reduction <maximumf>, %0, %cst_5 [2] : vector<2x8x8x128xf32> to vector<2x8x128xf32>
    %cst_6 = arith.constant dense<0.000000e+00> : vector<2x8x128xf32>
    %6 = vector.multi_reduction <add>, %0, %cst_6 [2] : vector<2x8x8x128xf32> to vector<2x8x128xf32>
    %cst_7 = arith.constant 1.250000e-01 : f32
    %7 = vector.broadcast %cst_7 : f32 to vector<2x8x128xf32>
    %8 = arith.mulf %6, %7 : vector<2x8x128xf32>
    %c0_8 = arith.constant 0 : index
    %9 = memref.load %arg1[%c0_8] : memref<2xf32, #tpu.memory_space<smem>>
    %10 = vector.shape_cast %1 : vector<2x8x128xf32> to vector<16x128xf32>
    %11 = arith.truncf %10 : vector<16x128xf32> to vector<16x128xbf16>
    %12 = vector.shape_cast %4 : vector<2x8x128xf32> to vector<16x128xf32>
    %13 = arith.truncf %12 : vector<16x128xf32> to vector<16x128xbf16>
    %c0_9 = arith.constant 0 : index
    %c0_10 = arith.constant 0 : index
    %c0_11 = arith.constant 0 : index
    %14 = vector.load %arg4[%c0_9, %c0_10, %c0_11] : memref<2x128x896xbf16, #tpu.memory_space<vmem>>, vector<1x128x896xbf16>
    %15 = vector.shape_cast %14 : vector<1x128x896xbf16> to vector<128x896xbf16>
    %cst_12 = arith.constant dense<0.000000e+00> : vector<16x896xf32>
    %16 = tpu.matmul %11, %15, %cst_12 {dimension_numbers = #tpu.dot_dimension_numbers<[1], [0], [0], [1], [0, 0, 1, 1], [], []>} : vector<16x128xbf16>, vector<128x896xbf16>, vector<16x896xf32> -> vector<16x896xf32>
    %c1 = arith.constant 1 : index
    %c0_13 = arith.constant 0 : index
    %c0_14 = arith.constant 0 : index
    %17 = vector.load %arg4[%c1, %c0_13, %c0_14] : memref<2x128x896xbf16, #tpu.memory_space<vmem>>, vector<1x128x896xbf16>
    %18 = vector.shape_cast %17 : vector<1x128x896xbf16> to vector<128x896xbf16>
    %cst_15 = arith.constant dense<0.000000e+00> : vector<16x896xf32>
    %19 = tpu.matmul %13, %18, %cst_15 {dimension_numbers = #tpu.dot_dimension_numbers<[1], [0], [0], [1], [0, 0, 1, 1], [], []>} : vector<16x128xbf16>, vector<128x896xbf16>, vector<16x896xf32> -> vector<16x896xf32>
    %20 = arith.addf %16, %19 : vector<16x896xf32>
    %21 = vector.shape_cast %20 : vector<16x896xf32> to vector<2x8x896xf32>
    %22 = tpu.iota {dimensions = array<i32: 1>} : vector<1x8x1xi32>
    %cst_16 = arith.constant 0.000000e+00 : f32
    %23 = vector.broadcast %cst_16 : f32 to vector<2x8x128xf32>
    %24 = vector.extract_strided_slice %21 {offsets = [0, 0, 0], sizes = [2, 8, 128], strides = [1, 1, 1]} : vector<2x8x896xf32> to vector<2x8x128xf32>
    %c3_i32 = arith.constant 3 : i32
    %25 = tpu.dynamic_rotate %24 by %c3_i32 dim 1 : vector<2x8x128xf32>, i32 -> vector<2x8x128xf32>
    %c3_i32_17 = arith.constant 3 : i32
    %26 = vector.broadcast %c3_i32_17 : i32 to vector<1x8x1xi32>
    %27 = arith.cmpi sge, %22, %26 : vector<1x8x1xi32>
    %cst_18 = arith.constant 0.000000e+00 : f32
    %28 = vector.shape_cast %27 : vector<1x8x1xi1> to vector<1x8x1xi1>
    %29 = vector.broadcast %28 : vector<1x8x1xi1> to vector<2x8x128xi1>
    %30 = vector.broadcast %cst_18 : f32 to vector<2x8x128xf32>
    %31 = arith.select %29, %25, %30 : vector<2x8x128xi1>, vector<2x8x128xf32>
    %32 = arith.addf %23, %31 : vector<2x8x128xf32>
    %33 = vector.extract_strided_slice %21 {offsets = [0, 0, 128], sizes = [2, 8, 128], strides = [1, 1, 1]} : vector<2x8x896xf32> to vector<2x8x128xf32>
    %c2_i32 = arith.constant 2 : i32
    %34 = tpu.dynamic_rotate %33 by %c2_i32 dim 1 : vector<2x8x128xf32>, i32 -> vector<2x8x128xf32>
    %c2_i32_19 = arith.constant 2 : i32
    %35 = vector.broadcast %c2_i32_19 : i32 to vector<1x8x1xi32>
    %36 = arith.cmpi sge, %22, %35 : vector<1x8x1xi32>
    %cst_20 = arith.constant 0.000000e+00 : f32
    %37 = vector.shape_cast %36 : vector<1x8x1xi1> to vector<1x8x1xi1>
    %38 = vector.broadcast %37 : vector<1x8x1xi1> to vector<2x8x128xi1>
    %39 = vector.broadcast %cst_20 : f32 to vector<2x8x128xf32>
    %40 = arith.select %38, %34, %39 : vector<2x8x128xi1>, vector<2x8x128xf32>
    %41 = arith.addf %32, %40 : vector<2x8x128xf32>
    %42 = vector.extract_strided_slice %21 {offsets = [0, 0, 256], sizes = [2, 8, 128], strides = [1, 1, 1]} : vector<2x8x896xf32> to vector<2x8x128xf32>
    %c1_i32 = arith.constant 1 : i32
    %43 = tpu.dynamic_rotate %42 by %c1_i32 dim 1 : vector<2x8x128xf32>, i32 -> vector<2x8x128xf32>
    %c1_i32_21 = arith.constant 1 : i32
    %44 = vector.broadcast %c1_i32_21 : i32 to vector<1x8x1xi32>
    %45 = arith.cmpi sge, %22, %44 : vector<1x8x1xi32>
    %cst_22 = arith.constant 0.000000e+00 : f32
    %46 = vector.shape_cast %45 : vector<1x8x1xi1> to vector<1x8x1xi1>
    %47 = vector.broadcast %46 : vector<1x8x1xi1> to vector<2x8x128xi1>
    %48 = vector.broadcast %cst_22 : f32 to vector<2x8x128xf32>
    %49 = arith.select %47, %43, %48 : vector<2x8x128xi1>, vector<2x8x128xf32>
    %50 = arith.addf %41, %49 : vector<2x8x128xf32>
    %51 = vector.extract_strided_slice %21 {offsets = [0, 0, 384], sizes = [2, 8, 128], strides = [1, 1, 1]} : vector<2x8x896xf32> to vector<2x8x128xf32>
    %52 = arith.addf %50, %51 : vector<2x8x128xf32>
    %53 = vector.extract_strided_slice %21 {offsets = [0, 0, 512], sizes = [2, 8, 128], strides = [1, 1, 1]} : vector<2x8x896xf32> to vector<2x8x128xf32>
    %c7_i32 = arith.constant 7 : i32
    %54 = tpu.dynamic_rotate %53 by %c7_i32 dim 1 : vector<2x8x128xf32>, i32 -> vector<2x8x128xf32>
    %c7_i32_23 = arith.constant 7 : i32
    %55 = vector.broadcast %c7_i32_23 : i32 to vector<1x8x1xi32>
    %56 = arith.cmpi slt, %22, %55 : vector<1x8x1xi32>
    %cst_24 = arith.constant 0.000000e+00 : f32
    %57 = vector.shape_cast %56 : vector<1x8x1xi1> to vector<1x8x1xi1>
    %58 = vector.broadcast %57 : vector<1x8x1xi1> to vector<2x8x128xi1>
    %59 = vector.broadcast %cst_24 : f32 to vector<2x8x128xf32>
    %60 = arith.select %58, %54, %59 : vector<2x8x128xi1>, vector<2x8x128xf32>
    %61 = arith.addf %52, %60 : vector<2x8x128xf32>
    %62 = vector.extract_strided_slice %21 {offsets = [0, 0, 640], sizes = [2, 8, 128], strides = [1, 1, 1]} : vector<2x8x896xf32> to vector<2x8x128xf32>
    %c6_i32 = arith.constant 6 : i32
    %63 = tpu.dynamic_rotate %62 by %c6_i32 dim 1 : vector<2x8x128xf32>, i32 -> vector<2x8x128xf32>
    %c6_i32_25 = arith.constant 6 : i32
    %64 = vector.broadcast %c6_i32_25 : i32 to vector<1x8x1xi32>
    %65 = arith.cmpi slt, %22, %64 : vector<1x8x1xi32>
    %cst_26 = arith.constant 0.000000e+00 : f32
    %66 = vector.shape_cast %65 : vector<1x8x1xi1> to vector<1x8x1xi1>
    %67 = vector.broadcast %66 : vector<1x8x1xi1> to vector<2x8x128xi1>
    %68 = vector.broadcast %cst_26 : f32 to vector<2x8x128xf32>
    %69 = arith.select %67, %63, %68 : vector<2x8x128xi1>, vector<2x8x128xf32>
    %70 = arith.addf %61, %69 : vector<2x8x128xf32>
    %71 = vector.extract_strided_slice %21 {offsets = [0, 0, 768], sizes = [2, 8, 128], strides = [1, 1, 1]} : vector<2x8x896xf32> to vector<2x8x128xf32>
    %c5_i32 = arith.constant 5 : i32
    %72 = tpu.dynamic_rotate %71 by %c5_i32 dim 1 : vector<2x8x128xf32>, i32 -> vector<2x8x128xf32>
    %c5_i32_27 = arith.constant 5 : i32
    %73 = vector.broadcast %c5_i32_27 : i32 to vector<1x8x1xi32>
    %74 = arith.cmpi slt, %22, %73 : vector<1x8x1xi32>
    %cst_28 = arith.constant 0.000000e+00 : f32
    %75 = vector.shape_cast %74 : vector<1x8x1xi1> to vector<1x8x1xi1>
    %76 = vector.broadcast %75 : vector<1x8x1xi1> to vector<2x8x128xi1>
    %77 = vector.broadcast %cst_28 : f32 to vector<2x8x128xf32>
    %78 = arith.select %76, %72, %77 : vector<2x8x128xi1>, vector<2x8x128xf32>
    %79 = arith.addf %70, %78 : vector<2x8x128xf32>
    %80 = vector.broadcast %9 : f32 to vector<2x8x128xf32>
    %81 = arith.addf %79, %80 : vector<2x8x128xf32>
    %82 = arith.negf %81 : vector<2x8x128xf32>
    %83 = math.exp %82 : vector<2x8x128xf32>
    %cst_29 = arith.constant 1.000000e+00 : f32
    %84 = vector.broadcast %cst_29 : f32 to vector<2x8x128xf32>
    %85 = arith.addf %84, %83 : vector<2x8x128xf32>
    %86 = arith.divf %84, %85 : vector<2x8x128xf32>
    %87 = arith.mulf %86, %4 : vector<2x8x128xf32>
    %cst_30 = arith.constant dense<0.000000e+00> : vector<2x128xf32>
    %88 = vector.multi_reduction <add>, %87, %cst_30 [1] : vector<2x8x128xf32> to vector<2x128xf32>
    %cst_31 = arith.constant 1.250000e-01 : f32
    %89 = vector.broadcast %cst_31 : f32 to vector<2x128xf32>
    %90 = arith.mulf %88, %89 : vector<2x128xf32>
    %c1_32 = arith.constant 1 : index
    %91 = memref.load %arg1[%c1_32] : memref<2xf32, #tpu.memory_space<smem>>
    %92 = vector.shape_cast %5 : vector<2x8x128xf32> to vector<16x128xf32>
    %93 = arith.truncf %92 : vector<16x128xf32> to vector<16x128xbf16>
    %94 = vector.shape_cast %8 : vector<2x8x128xf32> to vector<16x128xf32>
    %95 = arith.truncf %94 : vector<16x128xf32> to vector<16x128xbf16>
    %c0_33 = arith.constant 0 : index
    %c0_34 = arith.constant 0 : index
    %c0_35 = arith.constant 0 : index
    %96 = vector.load %arg5[%c0_33, %c0_34, %c0_35] : memref<2x128x896xbf16, #tpu.memory_space<vmem>>, vector<1x128x896xbf16>
    %97 = vector.shape_cast %96 : vector<1x128x896xbf16> to vector<128x896xbf16>
    %cst_36 = arith.constant dense<0.000000e+00> : vector<16x896xf32>
    %98 = tpu.matmul %93, %97, %cst_36 {dimension_numbers = #tpu.dot_dimension_numbers<[1], [0], [0], [1], [0, 0, 1, 1], [], []>} : vector<16x128xbf16>, vector<128x896xbf16>, vector<16x896xf32> -> vector<16x896xf32>
    %c1_37 = arith.constant 1 : index
    %c0_38 = arith.constant 0 : index
    %c0_39 = arith.constant 0 : index
    %99 = vector.load %arg5[%c1_37, %c0_38, %c0_39] : memref<2x128x896xbf16, #tpu.memory_space<vmem>>, vector<1x128x896xbf16>
    %100 = vector.shape_cast %99 : vector<1x128x896xbf16> to vector<128x896xbf16>
    %cst_40 = arith.constant dense<0.000000e+00> : vector<16x896xf32>
    %101 = tpu.matmul %95, %100, %cst_40 {dimension_numbers = #tpu.dot_dimension_numbers<[1], [0], [0], [1], [0, 0, 1, 1], [], []>} : vector<16x128xbf16>, vector<128x896xbf16>, vector<16x896xf32> -> vector<16x896xf32>
    %102 = arith.addf %98, %101 : vector<16x896xf32>
    %103 = vector.shape_cast %102 : vector<16x896xf32> to vector<2x8x896xf32>
    %104 = tpu.iota {dimensions = array<i32: 1>} : vector<1x8x1xi32>
    %cst_41 = arith.constant 0.000000e+00 : f32
    %105 = vector.broadcast %cst_41 : f32 to vector<2x8x128xf32>
    %106 = vector.extract_strided_slice %103 {offsets = [0, 0, 0], sizes = [2, 8, 128], strides = [1, 1, 1]} : vector<2x8x896xf32> to vector<2x8x128xf32>
    %c3_i32_42 = arith.constant 3 : i32
    %107 = tpu.dynamic_rotate %106 by %c3_i32_42 dim 1 : vector<2x8x128xf32>, i32 -> vector<2x8x128xf32>
    %c3_i32_43 = arith.constant 3 : i32
    %108 = vector.broadcast %c3_i32_43 : i32 to vector<1x8x1xi32>
    %109 = arith.cmpi sge, %104, %108 : vector<1x8x1xi32>
    %cst_44 = arith.constant 0.000000e+00 : f32
    %110 = vector.shape_cast %109 : vector<1x8x1xi1> to vector<1x8x1xi1>
    %111 = vector.broadcast %110 : vector<1x8x1xi1> to vector<2x8x128xi1>
    %112 = vector.broadcast %cst_44 : f32 to vector<2x8x128xf32>
    %113 = arith.select %111, %107, %112 : vector<2x8x128xi1>, vector<2x8x128xf32>
    %114 = arith.addf %105, %113 : vector<2x8x128xf32>
    %115 = vector.extract_strided_slice %103 {offsets = [0, 0, 128], sizes = [2, 8, 128], strides = [1, 1, 1]} : vector<2x8x896xf32> to vector<2x8x128xf32>
    %c2_i32_45 = arith.constant 2 : i32
    %116 = tpu.dynamic_rotate %115 by %c2_i32_45 dim 1 : vector<2x8x128xf32>, i32 -> vector<2x8x128xf32>
    %c2_i32_46 = arith.constant 2 : i32
    %117 = vector.broadcast %c2_i32_46 : i32 to vector<1x8x1xi32>
    %118 = arith.cmpi sge, %104, %117 : vector<1x8x1xi32>
    %cst_47 = arith.constant 0.000000e+00 : f32
    %119 = vector.shape_cast %118 : vector<1x8x1xi1> to vector<1x8x1xi1>
    %120 = vector.broadcast %119 : vector<1x8x1xi1> to vector<2x8x128xi1>
    %121 = vector.broadcast %cst_47 : f32 to vector<2x8x128xf32>
    %122 = arith.select %120, %116, %121 : vector<2x8x128xi1>, vector<2x8x128xf32>
    %123 = arith.addf %114, %122 : vector<2x8x128xf32>
    %124 = vector.extract_strided_slice %103 {offsets = [0, 0, 256], sizes = [2, 8, 128], strides = [1, 1, 1]} : vector<2x8x896xf32> to vector<2x8x128xf32>
    %c1_i32_48 = arith.constant 1 : i32
    %125 = tpu.dynamic_rotate %124 by %c1_i32_48 dim 1 : vector<2x8x128xf32>, i32 -> vector<2x8x128xf32>
    %c1_i32_49 = arith.constant 1 : i32
    %126 = vector.broadcast %c1_i32_49 : i32 to vector<1x8x1xi32>
    %127 = arith.cmpi sge, %104, %126 : vector<1x8x1xi32>
    %cst_50 = arith.constant 0.000000e+00 : f32
    %128 = vector.shape_cast %127 : vector<1x8x1xi1> to vector<1x8x1xi1>
    %129 = vector.broadcast %128 : vector<1x8x1xi1> to vector<2x8x128xi1>
    %130 = vector.broadcast %cst_50 : f32 to vector<2x8x128xf32>
    %131 = arith.select %129, %125, %130 : vector<2x8x128xi1>, vector<2x8x128xf32>
    %132 = arith.addf %123, %131 : vector<2x8x128xf32>
    %133 = vector.extract_strided_slice %103 {offsets = [0, 0, 384], sizes = [2, 8, 128], strides = [1, 1, 1]} : vector<2x8x896xf32> to vector<2x8x128xf32>
    %134 = arith.addf %132, %133 : vector<2x8x128xf32>
    %135 = vector.extract_strided_slice %103 {offsets = [0, 0, 512], sizes = [2, 8, 128], strides = [1, 1, 1]} : vector<2x8x896xf32> to vector<2x8x128xf32>
    %c7_i32_51 = arith.constant 7 : i32
    %136 = tpu.dynamic_rotate %135 by %c7_i32_51 dim 1 : vector<2x8x128xf32>, i32 -> vector<2x8x128xf32>
    %c7_i32_52 = arith.constant 7 : i32
    %137 = vector.broadcast %c7_i32_52 : i32 to vector<1x8x1xi32>
    %138 = arith.cmpi slt, %104, %137 : vector<1x8x1xi32>
    %cst_53 = arith.constant 0.000000e+00 : f32
    %139 = vector.shape_cast %138 : vector<1x8x1xi1> to vector<1x8x1xi1>
    %140 = vector.broadcast %139 : vector<1x8x1xi1> to vector<2x8x128xi1>
    %141 = vector.broadcast %cst_53 : f32 to vector<2x8x128xf32>
    %142 = arith.select %140, %136, %141 : vector<2x8x128xi1>, vector<2x8x128xf32>
    %143 = arith.addf %134, %142 : vector<2x8x128xf32>
    %144 = vector.extract_strided_slice %103 {offsets = [0, 0, 640], sizes = [2, 8, 128], strides = [1, 1, 1]} : vector<2x8x896xf32> to vector<2x8x128xf32>
    %c6_i32_54 = arith.constant 6 : i32
    %145 = tpu.dynamic_rotate %144 by %c6_i32_54 dim 1 : vector<2x8x128xf32>, i32 -> vector<2x8x128xf32>
    %c6_i32_55 = arith.constant 6 : i32
    %146 = vector.broadcast %c6_i32_55 : i32 to vector<1x8x1xi32>
    %147 = arith.cmpi slt, %104, %146 : vector<1x8x1xi32>
    %cst_56 = arith.constant 0.000000e+00 : f32
    %148 = vector.shape_cast %147 : vector<1x8x1xi1> to vector<1x8x1xi1>
    %149 = vector.broadcast %148 : vector<1x8x1xi1> to vector<2x8x128xi1>
    %150 = vector.broadcast %cst_56 : f32 to vector<2x8x128xf32>
    %151 = arith.select %149, %145, %150 : vector<2x8x128xi1>, vector<2x8x128xf32>
    %152 = arith.addf %143, %151 : vector<2x8x128xf32>
    %153 = vector.extract_strided_slice %103 {offsets = [0, 0, 768], sizes = [2, 8, 128], strides = [1, 1, 1]} : vector<2x8x896xf32> to vector<2x8x128xf32>
    %c5_i32_57 = arith.constant 5 : i32
    %154 = tpu.dynamic_rotate %153 by %c5_i32_57 dim 1 : vector<2x8x128xf32>, i32 -> vector<2x8x128xf32>
    %c5_i32_58 = arith.constant 5 : i32
    %155 = vector.broadcast %c5_i32_58 : i32 to vector<1x8x1xi32>
    %156 = arith.cmpi slt, %104, %155 : vector<1x8x1xi32>
    %cst_59 = arith.constant 0.000000e+00 : f32
    %157 = vector.shape_cast %156 : vector<1x8x1xi1> to vector<1x8x1xi1>
    %158 = vector.broadcast %157 : vector<1x8x1xi1> to vector<2x8x128xi1>
    %159 = vector.broadcast %cst_59 : f32 to vector<2x8x128xf32>
    %160 = arith.select %158, %154, %159 : vector<2x8x128xi1>, vector<2x8x128xf32>
    %161 = arith.addf %152, %160 : vector<2x8x128xf32>
    %162 = vector.broadcast %91 : f32 to vector<2x8x128xf32>
    %163 = arith.addf %161, %162 : vector<2x8x128xf32>
    %164 = arith.negf %163 : vector<2x8x128xf32>
    %165 = math.exp %164 : vector<2x8x128xf32>
    %cst_60 = arith.constant 1.000000e+00 : f32
    %166 = vector.broadcast %cst_60 : f32 to vector<2x8x128xf32>
    %167 = arith.addf %166, %165 : vector<2x8x128xf32>
    %168 = arith.divf %166, %167 : vector<2x8x128xf32>
    %169 = arith.mulf %168, %8 : vector<2x8x128xf32>
    %cst_61 = arith.constant dense<0.000000e+00> : vector<2x128xf32>
    %170 = vector.multi_reduction <add>, %169, %cst_61 [1] : vector<2x8x128xf32> to vector<2x128xf32>
    %cst_62 = arith.constant 1.250000e-01 : f32
    %171 = vector.broadcast %cst_62 : f32 to vector<2x128xf32>
    %172 = arith.mulf %170, %171 : vector<2x128xf32>
    %c0_63 = arith.constant 0 : index
    %c0_64 = arith.constant 0 : index
    %173 = vector.load %arg2[%c0_63, %c0_64] : memref<2x128xf32, #tpu.memory_space<vmem>>, vector<2x128xf32>
    %174 = arith.truncf %173 : vector<2x128xf32> to vector<2x128xbf16>
    %c0_65 = arith.constant 0 : index
    %c0_66 = arith.constant 0 : index
    %c0_67 = arith.constant 0 : index
    %175 = vector.load %arg6[%c0_65, %c0_66, %c0_67] : memref<3x128x512xbf16, #tpu.memory_space<vmem>>, vector<1x128x512xbf16>
    %176 = vector.shape_cast %175 : vector<1x128x512xbf16> to vector<128x512xbf16>
    %cst_68 = arith.constant dense<0.000000e+00> : vector<2x512xf32>
    %177 = tpu.matmul %174, %176, %cst_68 {dimension_numbers = #tpu.dot_dimension_numbers<[1], [0], [0], [1], [0, 0, 1, 1], [], []>} : vector<2x128xbf16>, vector<128x512xbf16>, vector<2x512xf32> -> vector<2x512xf32>
    %c0_69 = arith.constant 0 : index
    %c0_70 = arith.constant 0 : index
    %c0_71 = arith.constant 0 : index
    %178 = vector.load %arg7[%c0_69, %c0_70, %c0_71] : memref<3x1x512xf32, #tpu.memory_space<vmem>>, vector<1x1x512xf32>
    %179 = vector.shape_cast %178 : vector<1x1x512xf32> to vector<1x512xf32>
    %180 = vector.broadcast %179 : vector<1x512xf32> to vector<2x512xf32>
    %181 = arith.addf %177, %180 : vector<2x512xf32>
    %c0_72 = arith.constant 0 : index
    %c0_73 = arith.constant 0 : index
    %c0_74 = arith.constant 0 : index
    %182 = vector.load %arg8[%c0_72, %c0_73, %c0_74] : memref<3x2x512xf32, #tpu.memory_space<vmem>>, vector<1x2x512xf32>
    %183 = vector.shape_cast %182 : vector<1x2x512xf32> to vector<2x512xf32>
    %184 = vector.shape_cast %181 : vector<2x512xf32> to vector<1x2x512xf32>
    tpu.vector_store %arg8[%c0_72, %c0_73, %c0_74], %184 {strides = array<i32>} : memref<3x2x512xf32, #tpu.memory_space<vmem>>, vector<1x2x512xf32>,
    %185 = arith.truncf %90 : vector<2x128xf32> to vector<2x128xbf16>
    %c1_75 = arith.constant 1 : index
    %c0_76 = arith.constant 0 : index
    %c0_77 = arith.constant 0 : index
    %186 = vector.load %arg6[%c1_75, %c0_76, %c0_77] : memref<3x128x512xbf16, #tpu.memory_space<vmem>>, vector<1x128x512xbf16>
    %187 = vector.shape_cast %186 : vector<1x128x512xbf16> to vector<128x512xbf16>
    %cst_78 = arith.constant dense<0.000000e+00> : vector<2x512xf32>
    %188 = tpu.matmul %185, %187, %cst_78 {dimension_numbers = #tpu.dot_dimension_numbers<[1], [0], [0], [1], [0, 0, 1, 1], [], []>} : vector<2x128xbf16>, vector<128x512xbf16>, vector<2x512xf32> -> vector<2x512xf32>
    %c1_79 = arith.constant 1 : index
    %c0_80 = arith.constant 0 : index
    %c0_81 = arith.constant 0 : index
    %189 = vector.load %arg7[%c1_79, %c0_80, %c0_81] : memref<3x1x512xf32, #tpu.memory_space<vmem>>, vector<1x1x512xf32>
    %190 = vector.shape_cast %189 : vector<1x1x512xf32> to vector<1x512xf32>
    %191 = vector.broadcast %190 : vector<1x512xf32> to vector<2x512xf32>
    %192 = arith.addf %188, %191 : vector<2x512xf32>
    %c1_82 = arith.constant 1 : index
    %c0_83 = arith.constant 0 : index
    %c0_84 = arith.constant 0 : index
    %193 = vector.load %arg8[%c1_82, %c0_83, %c0_84] : memref<3x2x512xf32, #tpu.memory_space<vmem>>, vector<1x2x512xf32>
    %194 = vector.shape_cast %193 : vector<1x2x512xf32> to vector<2x512xf32>
    %195 = vector.shape_cast %192 : vector<2x512xf32> to vector<1x2x512xf32>
    tpu.vector_store %arg8[%c1_82, %c0_83, %c0_84], %195 {strides = array<i32>} : memref<3x2x512xf32, #tpu.memory_space<vmem>>, vector<1x2x512xf32>,
    %196 = arith.truncf %172 : vector<2x128xf32> to vector<2x128xbf16>
    %c2 = arith.constant 2 : index
    %c0_85 = arith.constant 0 : index
    %c0_86 = arith.constant 0 : index
    %197 = vector.load %arg6[%c2, %c0_85, %c0_86] : memref<3x128x512xbf16, #tpu.memory_space<vmem>>, vector<1x128x512xbf16>
    %198 = vector.shape_cast %197 : vector<1x128x512xbf16> to vector<128x512xbf16>
    %cst_87 = arith.constant dense<0.000000e+00> : vector<2x512xf32>
    %199 = tpu.matmul %196, %198, %cst_87 {dimension_numbers = #tpu.dot_dimension_numbers<[1], [0], [0], [1], [0, 0, 1, 1], [], []>} : vector<2x128xbf16>, vector<128x512xbf16>, vector<2x512xf32> -> vector<2x512xf32>
    %c2_88 = arith.constant 2 : index
    %c0_89 = arith.constant 0 : index
    %c0_90 = arith.constant 0 : index
    %200 = vector.load %arg7[%c2_88, %c0_89, %c0_90] : memref<3x1x512xf32, #tpu.memory_space<vmem>>, vector<1x1x512xf32>
    %201 = vector.shape_cast %200 : vector<1x1x512xf32> to vector<1x512xf32>
    %202 = vector.broadcast %201 : vector<1x512xf32> to vector<2x512xf32>
    %203 = arith.addf %199, %202 : vector<2x512xf32>
    %c2_91 = arith.constant 2 : index
    %c0_92 = arith.constant 0 : index
    %c0_93 = arith.constant 0 : index
    %204 = vector.load %arg8[%c2_91, %c0_92, %c0_93] : memref<3x2x512xf32, #tpu.memory_space<vmem>>, vector<1x2x512xf32>
    %205 = vector.shape_cast %204 : vector<1x2x512xf32> to vector<2x512xf32>
    %206 = vector.shape_cast %203 : vector<2x512xf32> to vector<1x2x512xf32>
    tpu.vector_store %arg8[%c2_91, %c0_92, %c0_93], %206 {strides = array<i32>} : memref<3x2x512xf32, #tpu.memory_space<vmem>>, vector<1x2x512xf32>,
    return
  }
  func.func @transform_0(%arg0: i32, %arg1: memref<2xf32, #tpu.memory_space<smem>>) -> (i32, i32) {
    %c0_i32 = arith.constant 0 : i32
    %c0_i32_0 = arith.constant 0 : i32
    return %arg0, %c0_i32 : i32, i32
  }
  func.func @transform_1(%arg0: i32, %arg1: memref<2xf32, #tpu.memory_space<smem>>) -> (i32, i32, i32, i32) {
    %c0_i32 = arith.constant 0 : i32
    %c0_i32_0 = arith.constant 0 : i32
    %c0_i32_1 = arith.constant 0 : i32
    %c0_i32_2 = arith.constant 0 : i32
    return %arg0, %c0_i32, %c0_i32_0, %c0_i32_1 : i32, i32, i32, i32
  }
  func.func @transform_2(%arg0: i32, %arg1: memref<2xf32, #tpu.memory_space<smem>>) -> (i32, i32, i32) {
    %c0_i32 = arith.constant 0 : i32
    %c0_i32_0 = arith.constant 0 : i32
    %c0_i32_1 = arith.constant 0 : i32
    %c0_i32_2 = arith.constant 0 : i32
    return %c0_i32, %c0_i32_0, %c0_i32_1 : i32, i32, i32
  }
  func.func @transform_3(%arg0: i32, %arg1: memref<2xf32, #tpu.memory_space<smem>>) -> (i32, i32, i32) {
    %c0_i32 = arith.constant 0 : i32
    %c0_i32_0 = arith.constant 0 : i32
    %c0_i32_1 = arith.constant 0 : i32
    %c0_i32_2 = arith.constant 0 : i32
    return %c0_i32, %c0_i32_0, %c0_i32_1 : i32, i32, i32
  }
  func.func @transform_4(%arg0: i32, %arg1: memref<2xf32, #tpu.memory_space<smem>>) -> (i32, i32, i32) {
    %c0_i32 = arith.constant 0 : i32
    %c0_i32_0 = arith.constant 0 : i32
    %c0_i32_1 = arith.constant 0 : i32
    %c0_i32_2 = arith.constant 0 : i32
    return %c0_i32, %c0_i32_0, %c0_i32_1 : i32, i32, i32
  }
  func.func @transform_5(%arg0: i32, %arg1: memref<2xf32, #tpu.memory_space<smem>>) -> (i32, i32, i32) {
    %c0_i32 = arith.constant 0 : i32
    %c0_i32_0 = arith.constant 0 : i32
    %c0_i32_1 = arith.constant 0 : i32
    %c0_i32_2 = arith.constant 0 : i32
    return %c0_i32, %c0_i32_0, %c0_i32_1 : i32, i32, i32
  }
  func.func @transform_6(%arg0: i32, %arg1: memref<2xf32, #tpu.memory_space<smem>>) -> (i32, i32, i32) {
    %c0_i32 = arith.constant 0 : i32
    %c0_i32_0 = arith.constant 0 : i32
    %c0_i32_1 = arith.constant 0 : i32
    return %c0_i32, %arg0, %c0_i32_0 : i32, i32, i32
  }
}

</mosaic_0001>

<bundles_post_ra>
// kernel: mccg_forward.1
= control target key start
LH: loop header
LB: loop body
LE: loop exit
PB: predicated region body
PF: predicated region fallthrough
CT: control target
= control target key end

     0   :  { %s6531_s0 = inlined_call_operand.vmem [shape: f32[2], index: 0, kind: input, shape index: {}]   ;;  %s6532_s1 = inlined_call_operand.vmem [shape: f32[2,128], index: 1, kind: input, shape index: {}]   ;;  %s6533_s2 = inlined_call_operand.vmem [shape: f32[2,8,8,128], index: 2, kind: input, shape index: {}]   ;;  %s6534_s3 = inlined_call_operand.vmem [shape: bf16[2,128,896], index: 3, kind: input, shape index: {}]   ;;  %s6535_s4 = inlined_call_operand.vmem [shape: bf16[2,128,896], index: 4, kind: input, shape index: {}]   ;;  %s6536_s5 = inlined_call_operand.vmem [shape: bf16[3,128,512], index: 5, kind: input, shape index: {}]   ;;  %s6537_s6 = inlined_call_operand.vmem [shape: f32[3,1,512], index: 6, kind: input, shape index: {}]   ;;  %s6538_s7 = inlined_call_operand.vmem [shape: f32[3,2,512], index: 7, kind: output, shape index: {}]  }
   0x1   :  { %s12_s26 = sshll.u32 %s6531_s0, 4  ;;  %s13_s26 = int_to_ptr.vmem [resolvable:$true] %s12_s26 }
   0x2   :  { %s4813_s27 = scalar_lea.vmem %s13_s26, 16  ;;  %p4818_p1 = scmp.lt.s32.totalorder %s13_s26, %s13_s26 }
   0x3   :  { %p4814_p0 = scmp.ne.s32.totalorder %s13_s26, %s4813_s27  ;;  %p4819_p2 = scmp.lt.s32.totalorder %s4813_s27, %s4813_s27 }
   0x5   :  { %p4820_p3 = por %p4819_p2, %p4818_p1 }
   0x7   :  { %p4821_p4 = pnand %p4820_p3, %p4814_p0 }
   0x9   :  { %4824 = shalt.err (!%p4821_p4)  }
   0xa   :  { %s4827_s28 = smov [#allocation3]  }
   0xb   :  { %15 = dma.vmem_to_smem %s13_s26, 16, %s4827_s28, [#allocation2] }
   0xc   :  { %4825 = dma.done.wait [#allocation2], 16 }
   0xd   :  { %4826 = vsyncadd [#allocation2], 4294967280 }
   0xe   :  { %17 = sfence }
   0xf   :  { %v4333_v0 = vld [vmem:[%s6534_s3 + $0x34c] ss:$28 sps:$4 sm:$0xff]   ;;  %v4335_v1 = vld [vmem:[%s6534_s3 + $0x354] ss:$28 sps:$4 sm:$0xff]   ;;  %v6557_v2 = vmov 0   ;;  %v4958_v27 = vld [vmem:[%s6533_s2] sm:$0xff] }
  0x10   :  { %737 = vmatprep.mubr.bf16.mxu0 %v6557_v2  ;;  %780 = vmatprep.mubr.bf16.mxu1 %v6557_v2  ;;  %v4337_v3 = vld [vmem:[%s6534_s3 + $0x348] ss:$28 sps:$4 sm:$0xff]   ;;  %v4338_v4 = vld [vmem:[%s6534_s3 + $0x350] ss:$28 sps:$4 sm:$0xff]   ;;  %v4341_v6 = vld [vmem:[%s6534_s3 + $0x31c] ss:$28 sps:$4 sm:$0xff]  }
  0x11   :  { %705 = vmatprep.subr.bf16.mxu0 %v4333_v0  ;;  %748 = vmatprep.subr.bf16.mxu1 %v4335_v1  ;;  %v4339_v5 = vld [vmem:[%s6534_s3 + $0x314] ss:$28 sps:$4 sm:$0xff]   ;;  %v4345_v9 = vld [vmem:[%s6534_s3 + $0x2dc] ss:$28 sps:$4 sm:$0xff]   ;;  %v4347_v10 = vld [vmem:[%s6534_s3 + $0x2e4] ss:$28 sps:$4 sm:$0xff]  }
  0x12   :  { %706 = vmatpush1.bf16.msra.mxu0 %v4337_v3  ;;  %749 = vmatpush1.bf16.msra.mxu1 %v4338_v4  ;;  %v4343_v7 = vld [vmem:[%s6534_s3 + $0x310] ss:$28 sps:$4 sm:$0xff]   ;;  %v4344_v8 = vld [vmem:[%s6534_s3 + $0x318] ss:$28 sps:$4 sm:$0xff]   ;;  %v4350_v12 = vld [vmem:[%s6534_s3 + $0x2e0] ss:$28 sps:$4 sm:$0xff]  }
  0x13   :  { %707 = vmatprep.subr.bf16.mxu0 %v4339_v5  ;;  %750 = vmatprep.subr.bf16.mxu1 %v4341_v6  ;;  %v4349_v11 = vld [vmem:[%s6534_s3 + $0x2d8] ss:$28 sps:$4 sm:$0xff]   ;;  %v4351_v13 = vld [vmem:[%s6534_s3 + $0x2a4] ss:$28 sps:$4 sm:$0xff]   ;;  %v4353_v14 = vld [vmem:[%s6534_s3 + $0x2ac] ss:$28 sps:$4 sm:$0xff]  }
  0x14   :  { %v4355_v15 = vld [vmem:[%s6534_s3 + $0x2a0] ss:$28 sps:$4 sm:$0xff]   ;;  %v4356_v16 = vld [vmem:[%s6534_s3 + $0x2a8] ss:$28 sps:$4 sm:$0xff]   ;;  %v4359_v18 = vld [vmem:[%s6534_s3 + $0x274] ss:$28 sps:$4 sm:$0xff]  }
  0x15   :  { %v4357_v17 = vld [vmem:[%s6534_s3 + $0x26c] ss:$28 sps:$4 sm:$0xff]   ;;  %v4363_v21 = vld [vmem:[%s6534_s3 + $0x234] ss:$28 sps:$4 sm:$0xff]   ;;  %v4365_v22 = vld [vmem:[%s6534_s3 + $0x23c] ss:$28 sps:$4 sm:$0xff]  }
  0x16   :  { %708 = vmatpush1.bf16.msra.mxu0 %v4343_v7  ;;  %751 = vmatpush1.bf16.msra.mxu1 %v4344_v8  ;;  %v4361_v19 = vld [vmem:[%s6534_s3 + $0x268] ss:$28 sps:$4 sm:$0xff]   ;;  %v4362_v20 = vld [vmem:[%s6534_s3 + $0x270] ss:$28 sps:$4 sm:$0xff]   ;;  %v4368_v24 = vld [vmem:[%s6534_s3 + $0x238] ss:$28 sps:$4 sm:$0xff]  }
  0x17   :  { %709 = vmatprep.subr.bf16.mxu0 %v4345_v9  ;;  %752 = vmatprep.subr.bf16.mxu1 %v4347_v10  ;;  %v4367_v23 = vld [vmem:[%s6534_s3 + $0x230] ss:$28 sps:$4 sm:$0xff]   ;;  %v4369_v25 = vld [vmem:[%s6534_s3 + $0x1fc] ss:$28 sps:$4 sm:$0xff]   ;;  %v4371_v26 = vld [vmem:[%s6534_s3 + $0x204] ss:$28 sps:$4 sm:$0xff]  }
  0x18   :  { %v4963_v28 = vld [vmem:[%s6533_s2 + $0x8] sm:$0xff]  ;;  %v4968_v29 = vld [vmem:[%s6533_s2 + $0x10] sm:$0xff]  ;;  %v4374_v32 = vld [vmem:[%s6534_s3 + $0x200] ss:$28 sps:$4 sm:$0xff]   ;;  %v6554_v60 = vmov 0.0   ;;  %vm4830_vm0 = vmmov 0  }
  0x19   :  { %v61_v30 = vadd.f32 %v4963_v28, %v4958_v27  ;;  %v4373_v31 = vld [vmem:[%s6534_s3 + $0x1f8] ss:$28 sps:$4 sm:$0xff]   ;;  %v4986_v34 = vld [vmem:[%s6533_s2 + $0x40] sm:$0xff]  ;;  %v4991_v35 = vld [vmem:[%s6533_s2 + $0x48] sm:$0xff]  ;;  %vm1616_vm1 = vcmask 1041409   ;;  %vm1618_vm2 = vcmask 1042434  }
  0x1a   :  { %710 = vmatpush1.bf16.msra.mxu0 %v4349_v11  ;;  %753 = vmatpush1.bf16.msra.mxu1 %v4350_v12  ;;  %v4981_v33 = vld [vmem:[%s6533_s2 + $0x18] sm:$0xff]  ;;  %v4996_v36 = vld [vmem:[%s6533_s2 + $0x50] sm:$0xff]  ;;  %v4375_v38 = vld [vmem:[%s6534_s3 + $0x1c4] ss:$28 sps:$4 sm:$0xff]   ;;  %v68_v41 = vadd.f32 %v4991_v35, %v4986_v34  ;;  %v6552_v12 = vrot.slane %v4958_v27, 4  ;;  %vm1620_vm3 = vcmask 1043459  }
  0x1b   :  { %711 = vmatprep.subr.bf16.mxu0 %v4351_v13  ;;  %754 = vmatprep.subr.bf16.mxu1 %v4353_v14  ;;  %v62_v37 = vadd.f32 %v61_v30, %v4968_v29  ;;  %v4377_v39 = vld [vmem:[%s6534_s3 + $0x1cc] ss:$28 sps:$4 sm:$0xff]   ;;  %v5008_v40 = vld [vmem:[%s6533_s2 + $0x20] sm:$0xff]  ;;  %v5021_v44 = vld [vmem:[%s6533_s2 + $0x58] sm:$0xff]  ;;  %vm1622_vm4 = vcmask 1044484   ;;  %vm1624_vm5 = vcmask 1045509  }
  0x1c   :  { %v4379_v42 = vld [vmem:[%s6534_s3 + $0x1c0] ss:$28 sps:$4 sm:$0xff]   ;;  %v4380_v43 = vld [vmem:[%s6534_s3 + $0x1c8] ss:$28 sps:$4 sm:$0xff]   ;;  %v5032_v47 = vld [vmem:[%s6533_s2 + $0x30] sm:$0xff]  ;;  %v69_v48 = vadd.f32 %v68_v41, %v4996_v36  ;;  %vm1626_vm6 = vcmask 1046534  }
  0x1d   :  { %v63_v45 = vadd.f32 %v62_v37, %v4981_v33  ;;  %v5027_v46 = vld [vmem:[%s6533_s2 + $0x28] sm:$0xff]  ;;  %v5038_v49 = vld [vmem:[%s6533_s2 + $0x60] sm:$0xff]  ;;  %v4383_v52 = vld [vmem:[%s6534_s3 + $0x35c] ss:$28 sps:$4 sm:$0xff]   ;;  %vm1628_vm7 = vcmask 1047559  }
  0x1e   :  { %712 = vmatpush1.bf16.msra.mxu0 %v4355_v15  ;;  %755 = vmatpush1.bf16.msra.mxu1 %v4356_v16  ;;  %v70_v51 = vadd.f32 %v69_v48, %v5021_v44  ;;  %v5048_v53 = vld [vmem:[%s6533_s2 + $0x68] sm:$0xff]  ;;  %v5054_v55 = vld [vmem:[%s6533_s2 + $0x38] sm:$0xff]  ;;  %v5060_v57 = vld [vmem:[%s6533_s2 + $0x70] sm:$0xff]  ;;  %v47_v15 = vmax.f32 %v4958_v27, %v4968_v29  ;;  %v6551_v16 = vrot.slane %v4963_v28, 4  ;;  %v6542_v37 = vrot.slane %v5027_v46, 4 }
  0x1f   :  { %713 = vmatprep.subr.bf16.mxu0 %v4357_v17  ;;  %756 = vmatprep.subr.bf16.mxu1 %v4359_v18  ;;  %v64_v50 = vadd.f32 %v63_v45, %v5008_v40  ;;  %6563 = vst [vmem:[#allocation5_spill] sm:$0xff] %v5048_v53  ;;  %v5068_v61 = vld [vmem:[%s6533_s2 + $0x78] sm:$0xff]  ;;  %v4387_v7 = vld [vmem:[%s6534_s3 + $0x324] ss:$28 sps:$4 sm:$0xff]   ;;  %v4391_v10 = vld [vmem:[%s6534_s3 + $0x2ec] ss:$28 sps:$4 sm:$0xff]   ;;  %v48_v17 = vmax.f32 %v4963_v28, %v4981_v33 }
  0x20   :  { %v71_v56 = vadd.f32 %v70_v51, %v5038_v49  ;;  %v4381_v4 = vld [vmem:[%s6534_s3 + $0x358] ss:$28 sps:$4 sm:$0xff]   ;;  %v4384_v5 = vld [vmem:[%s6534_s3 + $0x360] ss:$28 sps:$4 sm:$0xff]   ;;  %v4388_v9 = vld [vmem:[%s6534_s3 + $0x328] ss:$28 sps:$4 sm:$0xff]   ;;  %v5141_v30 = vmax.f32 %v47_v15, %v5008_v40 }
  0x21   :  { %v65_v54 = vadd.f32 %v64_v50, %v5027_v46  ;;  %v4385_v8 = vld [vmem:[%s6534_s3 + $0x320] ss:$28 sps:$4 sm:$0xff]   ;;  %v4389_v11 = vld [vmem:[%s6534_s3 + $0x2e8] ss:$28 sps:$4 sm:$0xff]   ;;  %v4392_v13 = vld [vmem:[%s6534_s3 + $0x2f0] ss:$28 sps:$4 sm:$0xff]  }
  0x22   :  { %714 = vmatpush1.bf16.msra.mxu0 %v4361_v19  ;;  %757 = vmatpush1.bf16.msra.mxu1 %v4362_v20  ;;  %v72_v59 = vadd.f32 %v71_v56, %v5048_v53  ;;  %v4395_v14 = vld [vmem:[%s6534_s3 + $0x2b4] ss:$28 sps:$4 sm:$0xff]   ;;  %v6550_v18 = vrot.slane %v4968_v29, 4  ;;  %v6547_v20 = vrot.slane %v4981_v33, 4  ;;  %v6544_v48 = vrot.slane %v5021_v44, 4 }
  0x23   :  { %715 = vmatprep.subr.bf16.mxu0 %v4363_v21  ;;  %758 = vmatprep.subr.bf16.mxu1 %v4365_v22  ;;  %v66_v58 = vadd.f32 %v65_v54, %v5032_v47  ;;  %v4393_v19 = vld [vmem:[%s6534_s3 + $0x2b0] ss:$28 sps:$4 sm:$0xff]   ;;  %v4396_v21 = vld [vmem:[%s6534_s3 + $0x2b8] ss:$28 sps:$4 sm:$0xff]   ;;  %v54_v22 = vmax.f32 %v4986_v34, %v4996_v36  ;;  %v4400_v50 = vld [vmem:[%s6534_s3 + $0x280] ss:$28 sps:$4 sm:$0xff]  }
  0x24   :  { %v73_v63 = vadd.f32 %v72_v59, %v5060_v57  ;;  %v4397_v41 = vld [vmem:[%s6534_s3 + $0x278] ss:$28 sps:$4 sm:$0xff]   ;;  %v186_v45 = vadd.f32 %v6550_v18, %v4968_v29  ;;  %v6548_v54 = vrot.slane %v5038_v49, 4  ;;  %v4403_v56 = vld [vmem:[%s6534_s3 + $0x244] ss:$28 sps:$4 sm:$0xff]   ;;  %v6549_v15 = vrot.slane %v5048_v53, 4 }
  0x25   :  { %v67_v62 = vadd.f32 %v66_v58, %v5054_v55  ;;  %v5166_v51 = vmax.f32 %v54_v22, %v5038_v49  ;;  %v204_v22 = vadd.f32 %v6542_v37, %v5027_v46 }
  0x26   :  { %716 = vmatpush1.bf16.msra.mxu0 %v4367_v23  ;;  %759 = vmatpush1.bf16.msra.mxu1 %v4368_v24  ;;  %v74_v0 = vadd.f32 %v73_v63, %v5068_v61  ;;  %v174_v23 = vadd.f32 %v6552_v12, %v4958_v27  ;;  %v6541_v24 = vrot.slane %v4986_v34, 4 }
  0x27   :  { %717 = vmatprep.subr.bf16.mxu0 %v4369_v25  ;;  %760 = vmatprep.subr.bf16.mxu1 %v4371_v26  ;;  %v5073_v1 = vmul.f32 0.125, %v67_v62  ;;  %v6540_v25 = vrot.slane %v4991_v35, 4  ;;  %v4399_v26 = vld [vmem:[%s6534_s3 + $0x27c] ss:$28 sps:$4 sm:$0xff]  }
  0x28   :  { %v5075_v3 = vmul.f32 0.125, %v74_v0  ;;  %v222_v59 = vadd.f32 %v6541_v24, %v4986_v34  ;;  %v6545_v0 = vrot.slane %v5054_v55, 4 }
  0x29   :  { %6564 = vst [vmem:[#allocation6_spill] sm:$0xff] %v5073_v1  ;;  %v228_v62 = vadd.f32 %v6540_v25, %v4991_v35  ;;  %v6556_v25 = vrot.slane %v5068_v61, 4 }
  0x2a   :  { %718 = vmatpush1.bf16.msra.mxu0 %v4373_v31  ;;  %761 = vmatpush1.bf16.msra.mxu1 %v4374_v32  ;;  %6565 = vst [vmem:[#allocation7_spill] sm:$0xff] %v5075_v3  ;;  %v5085_v6 = vpack.c.bf16 %v5075_v3, %v5073_v1  ;;  %v6543_v31 = vrot.slane %v5008_v40, 4  ;;  %v5145_v32 = vmax.f32 %v48_v17, %v5027_v46  ;;  %v6553_v17 = vrot.slane %v5060_v57, 4 }
  0x2b   :  { %719 = vmatprep.subr.bf16.mxu0 %v4375_v38  ;;  %762 = vmatprep.subr.bf16.mxu1 %v4377_v39  ;;  %v180_v38 = vadd.f32 %v6551_v16, %v4963_v28  ;;  %v6539_v39 = vrot.slane %v4996_v36, 4 }
  0x2e   :  { %720 = vmatpush1.bf16.msra.mxu0 %v4379_v42  ;;  %763 = vmatpush1.bf16.msra.mxu1 %v4380_v43  ;;  %v55_v42 = vmax.f32 %v4991_v35, %v5021_v44  ;;  %v6546_v43 = vrot.slane %v5032_v47, 4 }
  0x2f   :  { %791 = vmatprep.subr.bf16.mxu0 %v4383_v52  ;;  %4248 = vmatprep.subr.bf16.mxu1 %v6554_v60  ;;  %v175_v52 = vrot.slane %v174_v23, 2 }
  0x31   :  { %738 = vmatmul.mubr.bf16.vlgmr.msra.gmra.mxu0 %v5085_v6  ;;  %781 = vmatmul.mubr.bf16.vlgmr.msra.gmra.mxu1 %v5085_v6 }
  0x32   :  { %792 = vmatpush1.bf16.msra.mxu0 %v4381_v4  ;;  %4249 = vmatpush3.bf16.msra.mxu1 %v4384_v5  ;;  %v181_v4 = vrot.slane %v180_v38, 2  ;;  %v192_v5 = vadd.f32 %v6547_v20, %v4981_v33 }
  0x33   :  { %793 = vmatprep.subr.bf16.mxu0 %v4387_v7  ;;  %4250 = vmatprep.subr.bf16.mxu1 %v6554_v60  ;;  %v4401_v7 = vld [vmem:[%s6534_s3 + $0x240] ss:$28 sps:$4 sm:$0xff]  }
  0x34   :  { %823 = vmatprep.mubr.bf16.mxu0 %v6557_v2  ;;  %4264 = vmatprep.mubr.msk.bf16.mxu1 %vm4830_vm0, %v6554_v60 }
  0x36   :  { %794 = vmatpush1.bf16.msra.mxu0 %v4385_v8  ;;  %4251 = vmatpush3.bf16.msra.mxu1 %v4388_v9  ;;  %v5191_v8 = vmax.f32 %v55_v42, %v5048_v53  ;;  %v187_v9 = vrot.slane %v186_v45, 2  ;;  %v240_v42 = vadd.f32 %v6544_v48, %v5021_v44  ;;  %v246_v48 = vadd.f32 %v6548_v54, %v5038_v49  ;;  %v4409_v54 = vld [vmem:[%s6534_s3 + $0x1d0] ss:$28 sps:$4 sm:$0xff]  }
  0x37   :  { %795 = vmatprep.subr.bf16.mxu0 %v4391_v10  ;;  %4252 = vmatprep.subr.bf16.mxu1 %v6554_v60  ;;  %v198_v10 = vadd.f32 %v6543_v31, %v5008_v40 }
  0x38   :  { %v188_v24 = vadd.f32 %v187_v9, %v186_v45  ;;  %v258_v45 = vadd.f32 %v6553_v17, %v5060_v57  ;;  %v205_v9 = vrot.slane %v204_v22, 2  ;;  %v241_v20 = vrot.slane %v240_v42, 2  ;;  %v4415_v17 = vld [vmem:[%s6534_s3 + $0x18c] ss:$28 sps:$4 sm:$0xff]  }
  0x39   :  { %v199_v37 = vrot.slane %v198_v10, 2 }
  0x3a   :  { %796 = vmatpush1.bf16.msra.mxu0 %v4389_v11  ;;  %4253 = vmatpush3.bf16.msra.mxu1 %v4392_v13  ;;  %v234_v11 = vadd.f32 %v6539_v39, %v4996_v36  ;;  %v4404_v13 = vld [vmem:[%s6534_s3 + $0x248] ss:$28 sps:$4 sm:$0xff]   ;;  %v193_v39 = vrot.slane %v192_v5, 2  ;;  %v242_v63 = vadd.f32 %v241_v20, %v240_v42  ;;  %v4421_v20 = vld [vmem:[%s6534_s3 + $0x154] ss:$28 sps:$4 sm:$0xff]  }
  0x3b   :  { %797 = vmatprep.subr.bf16.mxu0 %v4395_v14  ;;  %4254 = vmatprep.subr.bf16.mxu1 %v6554_v60  ;;  %v189_v14 = vrot.slane %v188_v24, 1 }
  0x3c   :  { %v235_v31 = vrot.slane %v234_v11, 2  ;;  %v194_v18 = vadd.f32 %v193_v39, %v192_v5 }
  0x3d   :  { %v190_v42 = vadd.f32 %v189_v14, %v188_v24 }
  0x3e   :  { %798 = vmatpush1.bf16.msra.mxu0 %v4393_v19  ;;  %4255 = vmatpush3.bf16.msra.mxu1 %v4396_v21  ;;  %v176_v19 = vadd.f32 %v175_v52, %v174_v23  ;;  %v4407_v21 = vld [vmem:[%s6534_s3 + $0x20c] ss:$28 sps:$4 sm:$0xff]   ;;  %v210_v23 = vadd.f32 %v6546_v43, %v5032_v47  ;;  %v216_v52 = vadd.f32 %v6545_v0, %v5054_v55 }
  0x3f   :  { %799 = vmatprep.subr.bf16.mxu0 %v4399_v26  ;;  %4256 = vmatprep.subr.bf16.mxu1 %v6554_v60  ;;  %v223_v26 = vrot.slane %v222_v59, 2  ;;  %v252_v0 = vadd.f32 %v6549_v15, %v5048_v53 }
  0x40   :  { %v211_v16 = vrot.slane %v210_v23, 2  ;;  %v217_v12 = vrot.slane %v216_v52, 2 }
  0x41   :  { %v253_v58 = vrot.slane %v252_v0, 2 }
  0x42   :  { %800 = vmatpush1.bf16.msra.mxu0 %v4397_v41  ;;  %4257 = vmatpush3.bf16.msra.mxu1 %v4400_v50  ;;  %v229_v41 = vrot.slane %v228_v62, 2  ;;  %v182_v50 = vadd.f32 %v181_v4, %v180_v38  ;;  %v4408_v38 = vld [vmem:[%s6534_s3 + $0x210] ss:$28 sps:$4 sm:$0xff]   ;;  %v177_v4 = vrot.slane %v176_v19, 1 }
  0x43   :  { %801 = vmatprep.subr.bf16.mxu0 %v4403_v56  ;;  %4258 = vmatprep.subr.bf16.mxu1 %v6554_v60  ;;  %v4405_v56 = vld [vmem:[%s6534_s3 + $0x208] ss:$28 sps:$4 sm:$0xff]   ;;  %v254_v1 = vadd.f32 %v253_v58, %v252_v0 }
  0x44   :  { %v230_v43 = vadd.f32 %v229_v41, %v228_v62  ;;  %v183_v15 = vrot.slane %v182_v50, 1  ;;  %v236_v62 = vadd.f32 %v235_v31, %v234_v11  ;;  %v178_v5 = vadd.f32 %v177_v4, %v176_v19  ;;  %v4416_v19 = vld [vmem:[%s6534_s3 + $0x190] ss:$28 sps:$4 sm:$0xff]  }
  0x45   :  { %v247_v41 = vrot.slane %v246_v48, 2  ;;  %v206_v31 = vadd.f32 %v205_v9, %v204_v22  ;;  %v212_v4 = vadd.f32 %v211_v16, %v210_v23  ;;  %v4424_v22 = vld [vmem:[%s6534_s3 + $0x15c] ss:$28 sps:$4 sm:$0xff]  }
  0x46   :  { %802 = vmatpush1.bf16.msra.mxu0 %v4401_v7  ;;  %4259 = vmatpush3.bf16.msra.mxu1 %v4404_v13  ;;  %v4411_v7 = vld [vmem:[%s6534_s3 + $0x1d4] ss:$28 sps:$4 sm:$0xff]   ;;  %v224_v13 = vadd.f32 %v223_v26, %v222_v59  ;;  %v200_v59 = vadd.f32 %v199_v37, %v198_v10  ;;  %v264_v26 = vadd.f32 %v6556_v25, %v5068_v61  ;;  %v231_v11 = vrot.slane %v230_v43, 1 }
  0x47   :  { %803 = vmatprep.subr.bf16.mxu0 %v4407_v21  ;;  %4260 = vmatprep.subr.bf16.mxu1 %v6554_v60  ;;  %v4412_v21 = vld [vmem:[%s6534_s3 + $0x1d8] ss:$28 sps:$4 sm:$0xff]   ;;  %v184_v25 = vadd.f32 %v183_v15, %v182_v50  ;;  %v237_v2 = vrot.slane %v236_v62, 1  ;;  %v248_v9 = vadd.f32 %v247_v41, %v246_v48  ;;  %v243_v50 = vrot.slane %v242_v63, 1  ;;  %v4430_v48 = vld [vmem:[%s6534_s3 + $0x124] ss:$28 sps:$4 sm:$0xff]  }
  0x48   :  { %v4418_v37 = vld [vmem:[%s6534_s3 + $0x194] ss:$28 sps:$4 sm:$0xff]   ;;  %v225_v10 = vrot.slane %v224_v13, 1  ;;  %v201_v39 = vrot.slane %v200_v59, 1  ;;  %v265_v3 = vrot.slane %v264_v26, 2  ;;  %v232_v15 = vadd.f32 %v231_v11, %v230_v43 }
  0x49   :  { %v4422_v23 = vld [vmem:[%s6534_s3 + $0x158] ss:$28 sps:$4 sm:$0xff]   ;;  %v238_v0 = vadd.f32 %v237_v2, %v236_v62 }
  0x4a   :  { %804 = vmatpush1.bf16.msra.mxu0 %v4405_v56  ;;  %4261 = vmatpush3.bf16.msra.mxu1 %v4408_v38  ;;  %v4413_v56 = vld [vmem:[%s6534_s3 + $0x188] ss:$28 sps:$4 sm:$0xff]   ;;  %v195_v38 = vrot.slane %v194_v18, 1  ;;  %v226_v16 = vadd.f32 %v225_v10, %v224_v13  ;;  %v4427_v43 = vld [vmem:[%s6534_s3 + $0x11c] ss:$28 sps:$4 sm:$0xff]   ;;  %v202_v58 = vadd.f32 %v201_v39, %v200_v59  ;;  %v266_v14 = vadd.f32 %v265_v3, %v264_v26 }
  0x4b   :  { %805 = vmatprep.subr.bf16.mxu0 %v4411_v7  ;;  %4262 = vmatprep.subr.bf16.mxu1 %v6554_v60  ;;  %v218_v7 = vadd.f32 %v217_v12, %v216_v52  ;;  %v259_v60 = vrot.slane %v258_v45, 2  ;;  %v207_v12 = vrot.slane %v206_v31, 1  ;;  %v244_v13 = vadd.f32 %v243_v50, %v242_v63  ;;  %v4425_v2 = vld [vmem:[%s6534_s3 + $0x118] ss:$28 sps:$4 sm:$0xff]   ;;  %v4428_v3 = vld [vmem:[%s6534_s3 + $0x120] ss:$28 sps:$4 sm:$0xff]  }
  0x4c   :  { %v196_v52 = vadd.f32 %v195_v38, %v194_v18  ;;  %v249_v18 = vrot.slane %v248_v9, 1  ;;  %v5290_v41 = vmul.f32 0.125, %v226_v16  ;;  %v6566_v59 = vmov 0   ;;  %v4433_v63 = vld [vmem:[%s6534_s3 + $0xe4] ss:$28 sps:$4 sm:$0xff]  }
  0x4d   :  { %v219_v53 = vrot.slane %v218_v7, 1  ;;  %v260_v24 = vadd.f32 %v259_v60, %v258_v45  ;;  %v5286_v60 = vmul.f32 0.125, %v178_v5  ;;  %v5288_v45 = vmul.f32 0.125, %v184_v25  ;;  %v4439_v16 = vld [vmem:[%s6534_s3 + $0xac] ss:$28 sps:$4 sm:$0xff]  }
  0x4e   :  { %806 = vmatpush1.bf16.msra.mxu0 %v4409_v54  ;;  %4263 = vmatpush3.bf16.msra.mxu1 %v4412_v21  ;;  %v4419_v54 = vld [vmem:[%s6534_s3 + $0x150] ss:$28 sps:$4 sm:$0xff]   ;;  %v213_v21 = vrot.slane %v212_v4, 1  ;;  %v267_v39 = vrot.slane %v266_v14, 1  ;;  %v5305_v5 = vmul.f32 0.125, %v190_v42  ;;  %v5313_v11 = vmul.f32 0.125, %v196_v52 }
  0x4f   :  { %1163 = vmatprep.subr.bf16.mxu0 %v4415_v17  ;;  %1206 = vmatprep.subr.bf16.mxu1 %v4418_v37  ;;  %v255_v17 = vrot.slane %v254_v1, 1  ;;  %v5292_v37 = vmul.f32 0.125, %v232_v15  ;;  %v220_v62 = vadd.f32 %v219_v53, %v218_v7  ;;  %v261_v26 = vrot.slane %v260_v24, 1  ;;  %v4442_v15 = vld [vmem:[%s6534_s3 + $0xb4] ss:$28 sps:$4 sm:$0xff]  }
  0x50   :  { %v214_v25 = vadd.f32 %v213_v21, %v212_v4  ;;  %v250_v53 = vadd.f32 %v249_v18, %v248_v9  ;;  %v5320_v4 = vmul.f32 0.125, %v244_v13  ;;  %v5330_v9 = vmul.f32 0.125, %v202_v58  ;;  %v4440_v13 = vld [vmem:[%s6534_s3 + $0xb0] ss:$28 sps:$4 sm:$0xff]  }
  0x51   :  { %824 = vmatmul.mubr.bf16.vlgmr.msra.gmra.mxu0 %v5085_v6  ;;  %4265 = vmatmul.mubr.bf16.vlgmr.msra.gmra.mxu1 %v5085_v6  ;;  %v208_v6 = vadd.f32 %v207_v12, %v206_v31  ;;  %v2672_v31 = vsel %vm1616_vm1, %v5288_v45, %v5286_v60  ;;  %v2679_v10 = vsel %vm1616_vm1, %v5292_v37, %v5290_v41 }
  0x52   :  { %1164 = vmatpush1.bf16.msra.mxu0 %v4413_v56  ;;  %1207 = vmatpush1.bf16.msra.mxu1 %v4416_v19  ;;  %v5315_v56 = vmul.f32 0.125, %v238_v0  ;;  %v4436_v19 = vld [vmem:[%s6534_s3 + $0xec] ss:$28 sps:$4 sm:$0xff]   ;;  %v256_v38 = vadd.f32 %v255_v17, %v254_v1  ;;  %v2673_v7 = vsel %vm1618_vm2, %v5305_v5, %v2672_v31  ;;  %v262_v42 = vadd.f32 %v261_v26, %v260_v24 }
  0x53   :  { %1165 = vmatprep.subr.bf16.mxu0 %v4421_v20  ;;  %1208 = vmatprep.subr.bf16.mxu1 %v4424_v22  ;;  %v4431_v20 = vld [vmem:[%s6534_s3 + $0xe0] ss:$28 sps:$4 sm:$0xff]   ;;  %v4434_v22 = vld [vmem:[%s6534_s3 + $0xe8] ss:$28 sps:$4 sm:$0xff]   ;;  %v2674_v1 = vsel %vm1620_vm3, %v5313_v11, %v2673_v7  ;;  %v6567_v50 = vmax.f32 %v5145_v32, %v5054_v55  ;;  %v268_v52 = vadd.f32 %v267_v39, %v266_v14  ;;  %v5356_v58 = vmul.f32 0.125, %v208_v6 }
  0x54   :  { %1195 = vmatprep.mubr.bf16.mxu0 %v6566_v59  ;;  %1238 = vmatprep.mubr.bf16.mxu1 %v6566_v59  ;;  %v2680_v12 = vsel %vm1618_vm2, %v5315_v56, %v2679_v10  ;;  %v6569_v24 = vmax.f32 %v5191_v8, %v5068_v61  ;;  %v5358_v32 = vmul.f32 0.125, %v250_v53  ;;  %v5362_v0 = vmul.f32 0.125, %v214_v25  ;;  %v4448_v39 = vld [vmem:[%s6534_s3 + $0x7c] ss:$28 sps:$4 sm:$0xff]  }
  0x55   :  { %v2681_v21 = vsel %vm1620_vm3, %v5320_v4, %v2680_v12  ;;  %v5364_v14 = vmul.f32 0.125, %v220_v62  ;;  %v5366_v18 = vmul.f32 0.125, %v256_v38  ;;  %v5371_v8 = vmul.f32 0.125, %v262_v42  ;;  %v4445_v62 = vld [vmem:[%s6534_s3 + $0x74] ss:$28 sps:$4 sm:$0xff]  }
  0x56   :  { %1166 = vmatpush1.bf16.msra.mxu0 %v4419_v54  ;;  %1209 = vmatpush1.bf16.msra.mxu1 %v4422_v23  ;;  %v6568_v54 = vmax.f32 %v5141_v30, %v5032_v47  ;;  %v2675_v30 = vsel %vm1622_vm4, %v5330_v9, %v2674_v1  ;;  %v2682_v6 = vsel %vm1622_vm4, %v5358_v32, %v2681_v21  ;;  %v6571_v10 = vrot.slane %v4958_v27, 4 }
  0x57   :  { %1167 = vmatprep.subr.bf16.mxu0 %v4427_v43  ;;  %1210 = vmatprep.subr.bf16.mxu1 %v4430_v48  ;;  %v6570_v43 = vmax.f32 %v5166_v51, %v5060_v57  ;;  %v4437_v51 = vld [vmem:[%s6534_s3 + $0xa8] ss:$28 sps:$4 sm:$0xff]   ;;  %v2676_v17 = vsel %vm1624_vm5, %v5356_v58, %v2675_v30  ;;  %v2683_v25 = vsel %vm1624_vm5, %v5366_v18, %v2682_v6  ;;  %v6573_v7 = vrot.slane %v4968_v29, 4 }
  0x58   :  { %v53_v23 = vmax.f32 %v6568_v54, %v6567_v50  ;;  %v78_v53 = vmax.f32 %v4958_v27, %v6571_v10  ;;  %v6575_v1 = vrot.slane %v5008_v40, 4  ;;  %v6581_v6 = vrot.slane %v4996_v36, 4 }
  0x59   :  { %v60_v48 = vmax.f32 %v6570_v43, %v6569_v24 }
  0x5a   :  { %1168 = vmatpush1.bf16.msra.mxu0 %v4425_v2  ;;  %1211 = vmatpush1.bf16.msra.mxu1 %v4428_v3  ;;  %v5380_v2 = vmul.f32 0.125, %v268_v52  ;;  %v2677_v3 = vsel %vm1626_vm6, %v5362_v0, %v2676_v17  ;;  %v102_v12 = vmax.f32 %v5008_v40, %v6575_v1  ;;  %v79_v50 = vrot.slane %v78_v53, 2  ;;  %v6584_v1 = vld [vmem:[#allocation5_spill] sm:$0xff] }
  0x5b   :  { %1169 = vmatprep.subr.bf16.mxu0 %v4433_v63  ;;  %1212 = vmatprep.subr.bf16.mxu1 %v4436_v19  ;;  %v5391_v26 = vsel %vm1628_vm7, %v5364_v14, %v2677_v3  ;;  %v2684_v63 = vsel %vm1626_vm6, %v5371_v8, %v2683_v25  ;;  %v6572_v19 = vrot.slane %v4963_v28, 4  ;;  %v6578_v40 = vrot.slane %v5054_v55, 4 }
  0x5c   :  { %v5400_v31 = vsel %vm1628_vm7, %v5380_v2, %v2684_v63  ;;  %v80_v30 = vmax.f32 %v78_v53, %v79_v50  ;;  %v103_v17 = vrot.slane %v102_v12, 2  ;;  %v6582_v63 = vrot.slane %v5021_v44, 4 }
  0x5d   :  { %v84_v38 = vmax.f32 %v4963_v28, %v6572_v19  ;;  %v4443_v28 = vld [vmem:[%s6534_s3 + $0x70] ss:$28 sps:$4 sm:$0xff]   ;;  %v120_v52 = vmax.f32 %v5054_v55, %v6578_v40  ;;  %v4454_v55 = vld [vmem:[%s6534_s3 + $0x44] ss:$28 sps:$4 sm:$0xff]  }
  0x5e   :  { %1170 = vmatpush1.bf16.msra.mxu0 %v4431_v20  ;;  %1213 = vmatpush1.bf16.msra.mxu1 %v4434_v22  ;;  %v90_v20 = vmax.f32 %v4968_v29, %v6573_v7  ;;  %v6574_v22 = vrot.slane %v4981_v33, 4  ;;  %v4446_v29 = vld [vmem:[%s6534_s3 + $0x78] ss:$28 sps:$4 sm:$0xff]   ;;  %v81_v10 = vrot.slane %v80_v30, 1  ;;  %v104_v19 = vmax.f32 %v102_v12, %v103_v17 }
  0x5f   :  { %1171 = vmatprep.subr.bf16.mxu0 %v4439_v16  ;;  %1214 = vmatprep.subr.bf16.mxu1 %v4442_v15  ;;  %v6576_v16 = vrot.slane %v5027_v46, 4  ;;  %v5426_v15 = vpack.c.bf16 %v60_v48, %v53_v23  ;;  %v85_v21 = vrot.slane %v84_v38, 2  ;;  %v6579_v23 = vrot.slane %v4986_v34, 4 }
  0x60   :  { %v96_v42 = vmax.f32 %v4981_v33, %v6574_v22  ;;  %v6577_v33 = vrot.slane %v5032_v47, 4  ;;  %v91_v24 = vrot.slane %v90_v20, 2  ;;  %v6580_v48 = vrot.slane %v4991_v35, 4 }
  0x61   :  { %v108_v27 = vmax.f32 %v5027_v46, %v6576_v16  ;;  %v4451_v46 = vld [vmem:[%s6534_s3 + $0x3c] ss:$28 sps:$4 sm:$0xff]   ;;  %v126_v43 = vmax.f32 %v4986_v34, %v6579_v23  ;;  %v86_v3 = vmax.f32 %v84_v38, %v85_v21  ;;  %v6585_v16 = vrot.slane %v6584_v1, 4 }
  0x62   :  { %v114_v54 = vmax.f32 %v5032_v47, %v6577_v33  ;;  %1172 = vmatpush1.bf16.msra.mxu0 %v4437_v51  ;;  %1215 = vmatpush1.bf16.msra.mxu1 %v4440_v13  ;;  %v132_v47 = vmax.f32 %v4991_v35, %v6580_v48  ;;  %v97_v51 = vrot.slane %v96_v42, 2  ;;  %v138_v13 = vmax.f32 %v4996_v36, %v6581_v6  ;;  %v4455_v23 = vld [vmem:[%s6534_s3] ss:$28 sps:$4 sm:$0xff]  }
  0x63   :  { %1173 = vmatprep.subr.bf16.mxu0 %v4445_v62  ;;  %1216 = vmatprep.subr.bf16.mxu1 %v4448_v39  ;;  %v92_v25 = vmax.f32 %v90_v20, %v91_v24  ;;  %v109_v34 = vrot.slane %v108_v27, 2  ;;  %v144_v35 = vmax.f32 %v5021_v44, %v6582_v63  ;;  %v4449_v62 = vld [vmem:[%s6534_s3 + $0x38] ss:$28 sps:$4 sm:$0xff]   ;;  %v4452_v39 = vld [vmem:[%s6534_s3 + $0x40] ss:$28 sps:$4 sm:$0xff]   ;;  %v6583_v36 = vrot.slane %v5038_v49, 4 }
  0x64   :  { %v98_v53 = vmax.f32 %v96_v42, %v97_v51  ;;  %v4457_v44 = vld [vmem:[%s6534_s3 + $0x4] ss:$28 sps:$4 sm:$0xff]   ;;  %v87_v7 = vrot.slane %v86_v3, 1  ;;  %v5469_v50 = vmax.f32 %v6584_v1, %v6585_v16  ;;  %v82_v42 = vmax.f32 %v80_v30, %v81_v10 }
  0x65   :  { %v5461_v38 = vmax.f32 %v5038_v49, %v6583_v36  ;;  %v93_v20 = vrot.slane %v92_v25, 1  ;;  %v110_v22 = vmax.f32 %v108_v27, %v109_v34  ;;  %v4460_v49 = vld [vmem:[%s6534_s3 + $0xc] ss:$28 sps:$4 sm:$0xff]   ;;  %v6587_v24 = vrot.slane %v5068_v61, 4 }
  0x66   :  { %1174 = vmatpush1.bf16.msra.mxu0 %v4443_v28  ;;  %1217 = vmatpush1.bf16.msra.mxu1 %v4446_v29  ;;  %v99_v12 = vrot.slane %v98_v53, 1  ;;  %v105_v28 = vrot.slane %v104_v19, 1  ;;  %v6586_v29 = vrot.slane %v5060_v57, 4  ;;  %v88_v27 = vmax.f32 %v86_v3, %v87_v7  ;;  %v4461_v7 = vld [vmem:[%s6534_s3 + $0x198] ss:$28 sps:$4 sm:$0xff]  }
  0x67   :  { %1175 = vmatprep.subr.bf16.mxu0 %v4451_v46  ;;  %1218 = vmatprep.subr.bf16.mxu1 %v4454_v55  ;;  %v94_v40 = vmax.f32 %v92_v25, %v93_v20  ;;  %v111_v21 = vrot.slane %v110_v22, 1  ;;  %v5482_v46 = vmax.f32 %v5068_v61, %v6587_v24  ;;  %v115_v30 = vrot.slane %v114_v54, 2  ;;  %v4463_v25 = vld [vmem:[%s6534_s3 + $0x19c] ss:$28 sps:$4 sm:$0xff]  }
  0x68   :  { %v5477_v33 = vmax.f32 %v5060_v57, %v6586_v29  ;;  %v5487_v48 = vmax.f32 %v98_v53, %v99_v12  ;;  %v5489_v55 = vmax.f32 %v104_v19, %v105_v28  ;;  %v1423_v51 = vpack.c.bf16 %v82_v42, %v82_v42  ;;  %v4458_v57 = vld [vmem:[%s6534_s3 + $0x8] ss:$28 sps:$4 sm:$0xff]  }
  0x69   :  { %v5494_v17 = vmax.f32 %v110_v22, %v111_v21  ;;  %v121_v61 = vrot.slane %v120_v52, 2  ;;  %v127_v6 = vrot.slane %v126_v43, 2  ;;  %v1424_v3 = vpack.c.bf16 %v88_v27, %v88_v27 }
  0x6a   :  { %1176 = vmatpush1.bf16.msra.mxu0 %v4449_v62  ;;  %1219 = vmatpush1.bf16.msra.mxu1 %v4452_v39  ;;  %v116_v34 = vmax.f32 %v114_v54, %v115_v30  ;;  %v133_v63 = vrot.slane %v132_v47, 2  ;;  %v139_v10 = vrot.slane %v138_v13, 2  ;;  %v1425_v62 = vpack.c.bf16 %v94_v40, %v94_v40  ;;  %v4464_v54 = vld [vmem:[%s6534_s3 + $0x1a0] ss:$28 sps:$4 sm:$0xff]  }
  0x6b   :  { %1177 = vmatprep.subr.bf16.mxu0 %v4457_v44  ;;  %1220 = vmatprep.subr.bf16.mxu1 %v4460_v49  ;;  %v122_v39 = vmax.f32 %v120_v52, %v121_v61  ;;  %v128_v53 = vmax.f32 %v126_v43, %v127_v6  ;;  %v145_v19 = vrot.slane %v144_v35, 2  ;;  %v1426_v36 = vpack.c.bf16 %v5487_v48, %v5487_v48 }
  0x6c   :  { %v117_v44 = vrot.slane %v116_v34, 1  ;;  %v134_v20 = vmax.f32 %v132_v47, %v133_v63  ;;  %v140_v22 = vmax.f32 %v138_v13, %v139_v10  ;;  %v1427_v1 = vpack.c.bf16 %v5489_v55, %v5489_v55  ;;  %v4467_v47 = vld [vmem:[%s6534_s3 + $0x164] ss:$28 sps:$4 sm:$0xff]  }
  0x6d   :  { %v123_v52 = vrot.slane %v122_v39, 1  ;;  %v129_v43 = vrot.slane %v128_v53, 1  ;;  %v146_v16 = vmax.f32 %v144_v35, %v145_v19  ;;  %v1428_v49 = vpack.c.bf16 %v5494_v17, %v5494_v17  ;;  %v4465_v35 = vld [vmem:[%s6534_s3 + $0x160] ss:$28 sps:$4 sm:$0xff]  }
  0x6e   :  { %1178 = vmatpush1.bf16.msra.mxu0 %v4455_v23  ;;  %1221 = vmatpush1.bf16.msra.mxu1 %v4458_v57  ;;  %v6588_v42 = vmov 0.0   ;;  %v118_v13 = vmax.f32 %v116_v34, %v117_v44  ;;  %v135_v12 = vrot.slane %v134_v20, 1  ;;  %v141_v28 = vrot.slane %v140_v22, 1 }
  0x6f   :  { %1249 = vmatprep.subr.bf16.mxu0 %v4463_v25  ;;  %4268 = vmatprep.subr.bf16.mxu1 %v6588_v42  ;;  %v2113_v29 = vunpack.c.l.b16 %v1423_v51  ;;  %v124_v27 = vmax.f32 %v122_v39, %v123_v52  ;;  %v130_v40 = vmax.f32 %v128_v53, %v129_v43  ;;  %v147_v21 = vrot.slane %v146_v16, 1  ;;  %v4468_v51 = vld [vmem:[%s6534_s3 + $0x168] ss:$28 sps:$4 sm:$0xff]  }
  0x70   :  { %v2114_v24 = vunpack.c.l.b16 %v1424_v3  ;;  %v136_v23 = vmax.f32 %v134_v20, %v135_v12  ;;  %v142_v48 = vmax.f32 %v140_v22, %v141_v28  ;;  %v151_v55 = vrot.slane %v5461_v38, 2  ;;  %v4471_v3 = vld [vmem:[%s6534_s3 + $0x12c] ss:$28 sps:$4 sm:$0xff]  }
  0x71   :  { %1196 = vmatmul.mubr.bf16.vlgmr.msra.gmra.mxu0 %v5426_v15  ;;  %1239 = vmatmul.mubr.bf16.vlgmr.msra.gmra.mxu1 %v5426_v15  ;;  %v1429_v30 = vpack.c.bf16 %v118_v13, %v118_v13  ;;  %v148_v57 = vmax.f32 %v146_v16, %v147_v21  ;;  %v1430_v17 = vpack.c.bf16 %v124_v27, %v124_v27  ;;  %v2115_v6 = vunpack.c.l.b16 %v1425_v62  ;;  %v4469_v22 = vld [vmem:[%s6534_s3 + $0x128] ss:$28 sps:$4 sm:$0xff]  }
  0x72   :  { %1250 = vmatpush1.bf16.msra.mxu0 %v4461_v7  ;;  %4269 = vmatpush3.bf16.msra.mxu1 %v4464_v54  ;;  %v1431_v61 = vpack.c.bf16 %v130_v40, %v130_v40  ;;  %v152_v25 = vmax.f32 %v5461_v38, %v151_v55  ;;  %v157_v34 = vrot.slane %v5469_v50, 2  ;;  %v163_v63 = vrot.slane %v5477_v33, 2  ;;  %v4472_v54 = vld [vmem:[%s6534_s3 + $0x130] ss:$28 sps:$4 sm:$0xff]  }
  0x73   :  { %1251 = vmatprep.subr.bf16.mxu0 %v4467_v47  ;;  %4270 = vmatprep.subr.bf16.mxu1 %v6588_v42  ;;  %v1432_v10 = vpack.c.bf16 %v136_v23, %v136_v23  ;;  %v1433_v62 = vpack.c.bf16 %v142_v48, %v142_v48  ;;  %v1434_v39 = vpack.c.bf16 %v148_v57, %v148_v57  ;;  %v2116_v53 = vunpack.c.l.b16 %v1426_v36  ;;  %v4473_v40 = vld [vmem:[%s6534_s3 + $0xf0] ss:$28 sps:$4 sm:$0xff]  }
  0x74   :  { %1281 = vmatprep.mubr.bf16.mxu0 %v6566_v59  ;;  %4284 = vmatprep.mubr.msk.bf16.mxu1 %vm4830_vm0, %v6588_v42  ;;  %v2117_v19 = vunpack.c.l.b16 %v1427_v1  ;;  %v153_v7 = vrot.slane %v152_v25, 1  ;;  %v158_v44 = vmax.f32 %v5469_v50, %v157_v34  ;;  %v164_v20 = vmax.f32 %v5477_v33, %v163_v63  ;;  %v4475_v50 = vld [vmem:[%s6534_s3 + $0xf4] ss:$28 sps:$4 sm:$0xff]  }
  0x75   :  { %v169_v38 = vrot.slane %v5482_v46, 2  ;;  %v2118_v52 = vunpack.c.l.b16 %v1428_v49  ;;  %v2119_v36 = vunpack.c.l.b16 %v1429_v30  ;;  %v2120_v1 = vunpack.c.l.b16 %v1430_v17  ;;  %v4477_v63 = vld [vmem:[%s6534_s3 + $0xb8] ss:$28 sps:$4 sm:$0xff]  }
  0x76   :  { %1252 = vmatpush1.bf16.msra.mxu0 %v4465_v35  ;;  %4271 = vmatpush3.bf16.msra.mxu1 %v4468_v51  ;;  %v2121_v43 = vunpack.c.l.b16 %v1431_v61  ;;  %v154_v33 = vmax.f32 %v152_v25, %v153_v7  ;;  %v159_v16 = vrot.slane %v158_v44, 1  ;;  %v2122_v13 = vunpack.c.l.b16 %v1432_v10  ;;  %v4479_v51 = vld [vmem:[%s6534_s3 + $0xbc] ss:$28 sps:$4 sm:$0xff]  }
  0x77   :  { %1253 = vmatprep.subr.bf16.mxu0 %v4471_v3  ;;  %4272 = vmatprep.subr.bf16.mxu1 %v6588_v42  ;;  %v170_v47 = vmax.f32 %v5482_v46, %v169_v38  ;;  %v165_v12 = vrot.slane %v164_v20, 1  ;;  %v2123_v28 = vunpack.c.l.b16 %v1433_v62  ;;  %v2124_v27 = vunpack.c.l.b16 %v1434_v39  ;;  %v4476_v46 = vld [vmem:[%s6534_s3 + $0xf8] ss:$28 sps:$4 sm:$0xff]  }
  0x78   :  { %v2129_v49 = vsel %vm1616_vm1, %v2114_v24, %v2113_v29  ;;  %v160_v21 = vmax.f32 %v158_v44, %v159_v16  ;;  %v1435_v35 = vpack.c.bf16 %v154_v33, %v154_v33  ;;  %v2136_v48 = vsel %vm1616_vm1, %v2122_v13, %v2121_v43  ;;  %v4487_v43 = vld [vmem:[%s6534_s3 + $0x4c] ss:$28 sps:$4 sm:$0xff]  }
  0x79   :  { %v2130_v23 = vsel %vm1618_vm2, %v2115_v6, %v2129_v49  ;;  %v166_v55 = vmax.f32 %v164_v20, %v165_v12  ;;  %v171_v30 = vrot.slane %v170_v47, 1  ;;  %v2137_v24 = vsel %vm1618_vm2, %v2123_v28, %v2136_v48  ;;  %v4483_v20 = vld [vmem:[%s6534_s3 + $0x84] ss:$28 sps:$4 sm:$0xff]   ;;  %v4488_v16 = vld [vmem:[%s6534_s3 + $0x50] ss:$28 sps:$4 sm:$0xff]  }
  0x7a   :  { %1254 = vmatpush1.bf16.msra.mxu0 %v4469_v22  ;;  %4273 = vmatpush3.bf16.msra.mxu1 %v4472_v54  ;;  %v2131_v29 = vsel %vm1620_vm3, %v2116_v53, %v2130_v23  ;;  %v1436_v57 = vpack.c.bf16 %v160_v21, %v160_v21  ;;  %v2125_v17 = vunpack.c.l.b16 %v1435_v35  ;;  %v2138_v6 = vsel %vm1620_vm3, %v2124_v27, %v2137_v24  ;;  %v4480_v53 = vld [vmem:[%s6534_s3 + $0xc0] ss:$28 sps:$4 sm:$0xff]   ;;  %v4485_v33 = vld [vmem:[%s6534_s3 + $0x48] ss:$28 sps:$4 sm:$0xff]   ;;  %v4489_v13 = vld [vmem:[%s6534_s3 + $0x10] ss:$28 sps:$4 sm:$0xff]  }
  0x7b   :  { %1255 = vmatprep.subr.bf16.mxu0 %v4475_v50  ;;  %4274 = vmatprep.subr.bf16.mxu1 %v6588_v42  ;;  %v2132_v61 = vsel %vm1622_vm4, %v2117_v19, %v2131_v29  ;;  %v172_v3 = vmax.f32 %v170_v47, %v171_v30  ;;  %v1437_v25 = vpack.c.bf16 %v166_v55, %v166_v55  ;;  %v4491_v47 = vld [vmem:[%s6534_s3 + $0x14] ss:$28 sps:$4 sm:$0xff]   ;;  %v4495_v28 = vld [vmem:[%s6535_s4 + $0x34c] ss:$28 sps:$4 sm:$0xff]   ;;  %v4504_v35 = vld [vmem:[%s6535_s4 + $0x31c] ss:$28 sps:$4 sm:$0xff]  }
  0x7c   :  { %v2133_v34 = vsel %vm1624_vm5, %v2118_v52, %v2132_v61  ;;  %v2126_v10 = vunpack.c.l.b16 %v1436_v57  ;;  %v2139_v39 = vsel %vm1622_vm4, %v2125_v17, %v2138_v6  ;;  %v4481_v52 = vld [vmem:[%s6534_s3 + $0x80] ss:$28 sps:$4 sm:$0xff]   ;;  %v4492_v12 = vld [vmem:[%s6534_s3 + $0x18] ss:$28 sps:$4 sm:$0xff]   ;;  %v4493_v49 = vld [vmem:[%s6535_s4 + $0x348] ss:$28 sps:$4 sm:$0xff]   ;;  %v1439_v23 = vpack.c.bf16 %v5286_v60, %v5286_v60 }
  0x7d   :  { %v2134_v62 = vsel %vm1626_vm6, %v2119_v36, %v2133_v34  ;;  %v1438_v19 = vpack.c.bf16 %v172_v3, %v172_v3  ;;  %v2127_v7 = vunpack.c.l.b16 %v1437_v25  ;;  %v4484_v36 = vld [vmem:[%s6534_s3 + $0x88] ss:$28 sps:$4 sm:$0xff]   ;;  %v4498_v27 = vld [vmem:[%s6535_s4 + $0x354] ss:$28 sps:$4 sm:$0xff]   ;;  %v1440_v48 = vpack.c.bf16 %v5288_v45, %v5288_v45  ;;  %v4507_v45 = vld [vmem:[%s6535_s4 + $0x2dc] ss:$28 sps:$4 sm:$0xff]  }
  0x7e   :  { %1256 = vmatpush1.bf16.msra.mxu0 %v4473_v40  ;;  %4275 = vmatpush3.bf16.msra.mxu1 %v4476_v46  ;;  %v2135_v44 = vsel %vm1628_vm7, %v2120_v1, %v2134_v62  ;;  %v2140_v38 = vsel %vm1624_vm5, %v2126_v10, %v2139_v39  ;;  %v4496_v40 = vld [vmem:[%s6535_s4 + $0x350] ss:$28 sps:$4 sm:$0xff]   ;;  %v1447_v46 = vpack.c.bf16 %v5290_v41, %v5290_v41  ;;  %v4502_v60 = vld [vmem:[%s6535_s4 + $0x318] ss:$28 sps:$4 sm:$0xff]   ;;  %v4510_v41 = vld [vmem:[%s6535_s4 + $0x2e4] ss:$28 sps:$4 sm:$0xff]   ;;  %v1600_v29 = vunpack.c.l.b16 %v1439_v23 }
  0x7f   :  { %1257 = vmatprep.subr.bf16.mxu0 %v4479_v51  ;;  %4276 = vmatprep.subr.bf16.mxu1 %v6588_v42  ;;  %v2128_v22 = vunpack.c.l.b16 %v1438_v19  ;;  %v2141_v54 = vsel %vm1626_vm6, %v2127_v7, %v2140_v38  ;;  %v4501_v21 = vld [vmem:[%s6535_s4 + $0x314] ss:$28 sps:$4 sm:$0xff]   ;;  %v1448_v55 = vpack.c.bf16 %v5292_v37, %v5292_v37  ;;  %v1441_v37 = vpack.c.bf16 %v5305_v5, %v5305_v5  ;;  %v4508_v61 = vld [vmem:[%s6535_s4 + $0x2e0] ss:$28 sps:$4 sm:$0xff]   ;;  %v4516_v3 = vld [vmem:[%s6535_s4 + $0x2ac] ss:$28 sps:$4 sm:$0xff]  }
  0x80   :  { %v4499_v30 = vld [vmem:[%s6535_s4 + $0x310] ss:$28 sps:$4 sm:$0xff]   ;;  %v1601_v24 = vunpack.c.l.b16 %v1440_v48  ;;  %v1608_v51 = vunpack.c.l.b16 %v1447_v46  ;;  %v4505_v17 = vld [vmem:[%s6535_s4 + $0x2d8] ss:$28 sps:$4 sm:$0xff]   ;;  %v4513_v5 = vld [vmem:[%s6535_s4 + $0x2a4] ss:$28 sps:$4 sm:$0xff]   ;;  %v1450_v6 = vpack.c.bf16 %v5320_v4, %v5320_v4  ;;  %v1443_v4 = vpack.c.bf16 %v5330_v9, %v5330_v9 }
  0x81   :  { %v2142_v1 = vsel %vm1628_vm7, %v2128_v22, %v2141_v54  ;;  %v1609_v57 = vunpack.c.l.b16 %v1448_v55  ;;  %v1602_v25 = vunpack.c.l.b16 %v1441_v37  ;;  %v4511_v62 = vld [vmem:[%s6535_s4 + $0x2a0] ss:$28 sps:$4 sm:$0xff]   ;;  %v1451_v39 = vpack.c.bf16 %v5358_v32, %v5358_v32  ;;  %v4517_v22 = vld [vmem:[%s6535_s4 + $0x268] ss:$28 sps:$4 sm:$0xff]   ;;  %v4529_v55 = vld [vmem:[%s6535_s4 + $0x1f8] ss:$28 sps:$4 sm:$0xff]  }
  0x82   :  { %1258 = vmatpush1.bf16.msra.mxu0 %v4477_v63  ;;  %4277 = vmatpush3.bf16.msra.mxu1 %v4480_v53  ;;  %v5592_v50 = vpack.c.b16 %v2142_v1, %v2135_v44  ;;  %v1617_v63 = vsel %vm1616_vm1, %v1601_v24, %v1600_v29  ;;  %v4519_v53 = vld [vmem:[%s6535_s4 + $0x26c] ss:$28 sps:$4 sm:$0xff]   ;;  %v1611_v7 = vunpack.c.l.b16 %v1450_v6  ;;  %v4522_v44 = vld [vmem:[%s6535_s4 + $0x274] ss:$28 sps:$4 sm:$0xff]   ;;  %v1444_v32 = vpack.c.bf16 %v5356_v58, %v5356_v58  ;;  %v4545_v6 = vld [vmem:[%s6535_s4 + $0x320] ss:$28 sps:$4 sm:$0xff]  }
  0x83   :  { %1259 = vmatprep.subr.bf16.mxu0 %v4483_v20  ;;  %4278 = vmatprep.subr.bf16.mxu1 %v6588_v42  ;;  %v1630_v10 = vsel %vm1616_vm1, %v1609_v57, %v1608_v51  ;;  %v1619_v20 = vsel %vm1618_vm2, %v1602_v25, %v1617_v63  ;;  %v1452_v38 = vpack.c.bf16 %v5366_v18, %v5366_v18  ;;  %v1604_v54 = vunpack.c.l.b16 %v1443_v4  ;;  %v4525_v1 = vld [vmem:[%s6535_s4 + $0x234] ss:$28 sps:$4 sm:$0xff]   ;;  %v4538_v29 = vld [vmem:[%s6535_s4 + $0x1c8] ss:$28 sps:$4 sm:$0xff]   ;;  %v4543_v57 = vld [vmem:[%s6535_s4 + $0x35c] ss:$28 sps:$4 sm:$0xff]  }
  0x84   :  { %v4551_v25 = vld [vmem:[%s6535_s4 + $0x2ec] ss:$28 sps:$4 sm:$0xff]   ;;  %v4559_v4 = vld [vmem:[%s6535_s4 + $0x27c] ss:$28 sps:$4 sm:$0xff]   ;;  %s6283_s3 = sld [smem:[#allocation3]] }
  0x85   :  { %v4552_v63 = vld [vmem:[%s6535_s4 + $0x2f0] ss:$28 sps:$4 sm:$0xff]  }
  0x86   :  { %1260 = vmatpush1.bf16.msra.mxu0 %v4481_v52  ;;  %4279 = vmatpush3.bf16.msra.mxu1 %v4484_v36  ;;  %v1612_v52 = vunpack.c.l.b16 %v1451_v39  ;;  %v4520_v36 = vld [vmem:[%s6535_s4 + $0x270] ss:$28 sps:$4 sm:$0xff]   ;;  %v4557_v39 = vld [vmem:[%s6535_s4 + $0x278] ss:$28 sps:$4 sm:$0xff]  }
  0x87   :  { %1261 = vmatprep.subr.bf16.mxu0 %v4487_v43  ;;  %4280 = vmatprep.subr.bf16.mxu1 %v6588_v42  ;;  %v4528_v43 = vld [vmem:[%s6535_s4 + $0x23c] ss:$28 sps:$4 sm:$0xff]  }
  0x8a   :  { %1262 = vmatpush1.bf16.msra.mxu0 %v4485_v33  ;;  %4281 = vmatpush3.bf16.msra.mxu1 %v4488_v16  ;;  %v1445_v33 = vpack.c.bf16 %v5362_v0, %v5362_v0  ;;  %v1453_v16 = vpack.c.bf16 %v5371_v8, %v5371_v8  ;;  %v4531_v0 = vld [vmem:[%s6535_s4 + $0x1fc] ss:$28 sps:$4 sm:$0xff]   ;;  %v1446_v8 = vpack.c.bf16 %v5364_v14, %v5364_v14 }
  0x8b   :  { %1263 = vmatprep.subr.bf16.mxu0 %v4491_v47  ;;  %4282 = vmatprep.subr.bf16.mxu1 %v6588_v42  ;;  %v4523_v47 = vld [vmem:[%s6535_s4 + $0x230] ss:$28 sps:$4 sm:$0xff]   ;;  %v4532_v14 = vld [vmem:[%s6535_s4 + $0x200] ss:$28 sps:$4 sm:$0xff]  }
  0x8c   :  { %v1614_v23 = vunpack.c.l.b16 %v1453_v16  ;;  %v4582_v16 = vld [vmem:[%s6535_s4 + $0x158] ss:$28 sps:$4 sm:$0xff]  }
  0x8e   :  { %1264 = vmatpush1.bf16.msra.mxu0 %v4489_v13  ;;  %4283 = vmatpush3.bf16.msra.mxu1 %v4492_v12  ;;  %v1605_v13 = vunpack.c.l.b16 %v1444_v32  ;;  %v1613_v12 = vunpack.c.l.b16 %v1452_v38  ;;  %v4568_v32 = vld [vmem:[%s6535_s4 + $0x210] ss:$28 sps:$4 sm:$0xff]  }
  0x8f   :  { %1927 = vmatprep.subr.bf16.mxu0 %v4495_v28  ;;  %1970 = vmatprep.subr.bf16.mxu1 %v4498_v27  ;;  %v4526_v28 = vld [vmem:[%s6535_s4 + $0x238] ss:$28 sps:$4 sm:$0xff]  }
  0x90   :  { %v4571_v38 = vld [vmem:[%s6535_s4 + $0x1d4] ss:$28 sps:$4 sm:$0xff]  }
  0x91   :  { %1282 = vmatmul.mubr.bf16.vlgmr.msra.gmra.mxu0 %v5426_v15  ;;  %4285 = vmatmul.mubr.bf16.vlgmr.msra.gmra.mxu1 %v5426_v15  ;;  %v1449_v15 = vpack.c.bf16 %v5315_v56, %v5315_v56  ;;  %v1442_v56 = vpack.c.bf16 %v5313_v11, %v5313_v11  ;;  %v4514_v11 = vld [vmem:[%s6535_s4 + $0x2a8] ss:$28 sps:$4 sm:$0xff]  }
  0x92   :  { %1928 = vmatpush1.bf16.msra.mxu0 %v4493_v49  ;;  %1971 = vmatpush1.bf16.msra.mxu1 %v4496_v40  ;;  %v1454_v40 = vpack.c.bf16 %v5380_v2, %v5380_v2  ;;  %v1607_v2 = vunpack.c.l.b16 %v1446_v8  ;;  %v4594_v8 = vld [vmem:[%s6535_s4 + $0xe8] ss:$28 sps:$4 sm:$0xff]  }
  0x93   :  { %1929 = vmatprep.subr.bf16.mxu0 %v4501_v21  ;;  %1972 = vmatprep.subr.bf16.mxu1 %v4504_v35  ;;  %v1610_v34 = vunpack.c.l.b16 %v1449_v15  ;;  %v1603_v19 = vunpack.c.l.b16 %v1442_v56  ;;  %v4534_v21 = vld [vmem:[%s6535_s4 + $0x204] ss:$28 sps:$4 sm:$0xff]   ;;  %v1606_v35 = vunpack.c.l.b16 %v1445_v33  ;;  %v4579_v33 = vld [vmem:[%s6535_s4 + $0x150] ss:$28 sps:$4 sm:$0xff]  }
  0x94   :  { %1959 = vmatprep.mubr.bf16.mxu0 %v6566_v59  ;;  %2002 = vmatprep.mubr.bf16.mxu1 %v6566_v59  ;;  %v4535_v15 = vld [vmem:[%s6535_s4 + $0x1c0] ss:$28 sps:$4 sm:$0xff]  }
  0x95   :  { %v1631_v9 = vsel %vm1618_vm2, %v1610_v34, %v1630_v10  ;;  %v1621_v58 = vsel %vm1620_vm3, %v1603_v19, %v1619_v20  ;;  %v4547_v56 = vld [vmem:[%s6535_s4 + $0x324] ss:$28 sps:$4 sm:$0xff]   ;;  %v4555_v10 = vld [vmem:[%s6535_s4 + $0x2b4] ss:$28 sps:$4 sm:$0xff]   ;;  %v4567_v20 = vld [vmem:[%s6535_s4 + $0x20c] ss:$28 sps:$4 sm:$0xff]  }
  0x96   :  { %1930 = vmatpush1.bf16.msra.mxu0 %v4499_v30  ;;  %1973 = vmatpush1.bf16.msra.mxu1 %v4502_v60  ;;  %v1632_v18 = vsel %vm1620_vm3, %v1611_v7, %v1631_v9  ;;  %v1623_v27 = vsel %vm1622_vm4, %v1604_v54, %v1621_v58  ;;  %v1615_v30 = vunpack.c.l.b16 %v1454_v40  ;;  %v4537_v60 = vld [vmem:[%s6535_s4 + $0x1c4] ss:$28 sps:$4 sm:$0xff]   ;;  %v4572_v54 = vld [vmem:[%s6535_s4 + $0x1d8] ss:$28 sps:$4 sm:$0xff]   ;;  %v4576_v58 = vld [vmem:[%s6535_s4 + $0x190] ss:$28 sps:$4 sm:$0xff]  }
  0x97   :  { %1931 = vmatprep.subr.bf16.mxu0 %v4507_v45  ;;  %1974 = vmatprep.subr.bf16.mxu1 %v4510_v41  ;;  %v1633_v49 = vsel %vm1622_vm4, %v1612_v52, %v1632_v18  ;;  %v1625_v48 = vsel %vm1624_vm5, %v1605_v13, %v1623_v27  ;;  %v4540_v45 = vld [vmem:[%s6535_s4 + $0x1cc] ss:$28 sps:$4 sm:$0xff]   ;;  %v4563_v19 = vld [vmem:[%s6535_s4 + $0x244] ss:$28 sps:$4 sm:$0xff]   ;;  %v4581_v18 = vld [vmem:[%s6535_s4 + $0x154] ss:$28 sps:$4 sm:$0xff]  }
  0x98   :  { %v1634_v46 = vsel %vm1624_vm5, %v1613_v12, %v1633_v49  ;;  %v1627_v41 = vsel %vm1626_vm6, %v1606_v35, %v1625_v48  ;;  %v4549_v34 = vld [vmem:[%s6535_s4 + $0x2e8] ss:$28 sps:$4 sm:$0xff]   ;;  %v4561_v7 = vld [vmem:[%s6535_s4 + $0x240] ss:$28 sps:$4 sm:$0xff]   ;;  %v4585_v12 = vld [vmem:[%s6535_s4 + $0x118] ss:$28 sps:$4 sm:$0xff]  }
  0x99   :  { %v1635_v37 = vsel %vm1626_vm6, %v1614_v23, %v1634_v46  ;;  %v1629_v24 = vsel %vm1628_vm7, %v1607_v2, %v1627_v41  ;;  %v4565_v9 = vld [vmem:[%s6535_s4 + $0x208] ss:$28 sps:$4 sm:$0xff]   ;;  %v4600_v23 = vld [vmem:[%s6535_s4 + $0xb0] ss:$28 sps:$4 sm:$0xff]   ;;  %v4608_v46 = vld [vmem:[%s6535_s4 + $0x7c] ss:$28 sps:$4 sm:$0xff]  }
  0x9a   :  { %1932 = vmatpush1.bf16.msra.mxu0 %v4505_v17  ;;  %1975 = vmatpush1.bf16.msra.mxu1 %v4508_v61  ;;  %v1636_v51 = vsel %vm1628_vm7, %v1615_v30, %v1635_v37  ;;  %v4541_v17 = vld [vmem:[%s6535_s4 + $0x358] ss:$28 sps:$4 sm:$0xff]   ;;  %v4544_v61 = vld [vmem:[%s6535_s4 + $0x360] ss:$28 sps:$4 sm:$0xff]   ;;  %v4575_v52 = vld [vmem:[%s6535_s4 + $0x18c] ss:$28 sps:$4 sm:$0xff]  }
  0x9b   :  { %1933 = vmatprep.subr.bf16.mxu0 %v4513_v5  ;;  %1976 = vmatprep.subr.bf16.mxu1 %v4516_v3  ;;  %v5766_v5 = vpack.c.b16 %v1636_v51, %v1629_v24  ;;  %v4548_v3 = vld [vmem:[%s6535_s4 + $0x328] ss:$28 sps:$4 sm:$0xff]   ;;  %v4605_v48 = vld [vmem:[%s6535_s4 + $0x74] ss:$28 sps:$4 sm:$0xff]   ;;  %v4611_v2 = vld [vmem:[%s6535_s4 + $0x3c] ss:$28 sps:$4 sm:$0xff]  }
  0x9c   :  { %v4590_v13 = vld [vmem:[%s6535_s4 + $0x124] ss:$28 sps:$4 sm:$0xff]   ;;  %v4596_v49 = vld [vmem:[%s6535_s4 + $0xec] ss:$28 sps:$4 sm:$0xff]   ;;  %v4623_v24 = vld [vmem:[%s6535_s4 + $0x19c] ss:$28 sps:$4 sm:$0xff]  }
  0x9d   :  { %v4593_v27 = vld [vmem:[%s6535_s4 + $0xe4] ss:$28 sps:$4 sm:$0xff]   ;;  %v4599_v40 = vld [vmem:[%s6535_s4 + $0xac] ss:$28 sps:$4 sm:$0xff]   ;;  %v4621_v51 = vld [vmem:[%s6535_s4 + $0x198] ss:$28 sps:$4 sm:$0xff]  }
  0x9e   :  { %1934 = vmatpush1.bf16.msra.mxu0 %v4511_v62  ;;  %1977 = vmatpush1.bf16.msra.mxu1 %v4514_v11  ;;  %v4553_v62 = vld [vmem:[%s6535_s4 + $0x2b0] ss:$28 sps:$4 sm:$0xff]   ;;  %v4556_v11 = vld [vmem:[%s6535_s4 + $0x2b8] ss:$28 sps:$4 sm:$0xff]   ;;  %v4597_v35 = vld [vmem:[%s6535_s4 + $0xa8] ss:$28 sps:$4 sm:$0xff]  }
  0x9f   :  { %1935 = vmatprep.subr.bf16.mxu0 %v4519_v53  ;;  %1978 = vmatprep.subr.bf16.mxu1 %v4522_v44  ;;  %v4560_v53 = vld [vmem:[%s6535_s4 + $0x280] ss:$28 sps:$4 sm:$0xff]   ;;  %v4564_v44 = vld [vmem:[%s6535_s4 + $0x248] ss:$28 sps:$4 sm:$0xff]  }
  0xa0   :  { %v4614_v30 = vld [vmem:[%s6535_s4 + $0x44] ss:$28 sps:$4 sm:$0xff]   ;;  %v4620_v37 = vld [vmem:[%s6535_s4 + $0xc] ss:$28 sps:$4 sm:$0xff]  }
  0xa1   :  { %v4617_v41 = vld [vmem:[%s6535_s4 + $0x4] ss:$28 sps:$4 sm:$0xff]  }
  0xa2   :  { %1936 = vmatpush1.bf16.msra.mxu0 %v4517_v22  ;;  %1979 = vmatpush1.bf16.msra.mxu1 %v4520_v36  ;;  %v4569_v22 = vld [vmem:[%s6535_s4 + $0x1d0] ss:$28 sps:$4 sm:$0xff]  }
  0xa3   :  { %1937 = vmatprep.subr.bf16.mxu0 %v4525_v1  ;;  %1980 = vmatprep.subr.bf16.mxu1 %v4528_v43  ;;  %v4578_v36 = vld [vmem:[%s6535_s4 + $0x194] ss:$28 sps:$4 sm:$0xff]   ;;  %v4573_v1 = vld [vmem:[%s6535_s4 + $0x188] ss:$28 sps:$4 sm:$0xff]   ;;  %v4584_v43 = vld [vmem:[%s6535_s4 + $0x15c] ss:$28 sps:$4 sm:$0xff]  }
  0xa6   :  { %1938 = vmatpush1.bf16.msra.mxu0 %v4523_v47  ;;  %1981 = vmatpush1.bf16.msra.mxu1 %v4526_v28  ;;  %v4587_v47 = vld [vmem:[%s6535_s4 + $0x11c] ss:$28 sps:$4 sm:$0xff]  }
  0xa7   :  { %1939 = vmatprep.subr.bf16.mxu0 %v4531_v0  ;;  %1982 = vmatprep.subr.bf16.mxu1 %v4534_v21  ;;  %v4588_v28 = vld [vmem:[%s6535_s4 + $0x120] ss:$28 sps:$4 sm:$0xff]   ;;  %v4602_v21 = vld [vmem:[%s6535_s4 + $0xb4] ss:$28 sps:$4 sm:$0xff]  }
  0xa8   :  { %v4591_v0 = vld [vmem:[%s6535_s4 + $0xe0] ss:$28 sps:$4 sm:$0xff]  }
  0xaa   :  { %1940 = vmatpush1.bf16.msra.mxu0 %v4529_v55  ;;  %1983 = vmatpush1.bf16.msra.mxu1 %v4532_v14  ;;  %v4603_v55 = vld [vmem:[%s6535_s4 + $0x70] ss:$28 sps:$4 sm:$0xff]   ;;  %v4606_v14 = vld [vmem:[%s6535_s4 + $0x78] ss:$28 sps:$4 sm:$0xff]  }
  0xab   :  { %1941 = vmatprep.subr.bf16.mxu0 %v4537_v60  ;;  %1984 = vmatprep.subr.bf16.mxu1 %v4540_v45  ;;  %v4609_v60 = vld [vmem:[%s6535_s4 + $0x38] ss:$28 sps:$4 sm:$0xff]   ;;  %v4612_v45 = vld [vmem:[%s6535_s4 + $0x40] ss:$28 sps:$4 sm:$0xff]  }
  0xae   :  { %1942 = vmatpush1.bf16.msra.mxu0 %v4535_v15  ;;  %1985 = vmatpush1.bf16.msra.mxu1 %v4538_v29  ;;  %v4615_v15 = vld [vmem:[%s6535_s4] ss:$28 sps:$4 sm:$0xff]   ;;  %v4618_v29 = vld [vmem:[%s6535_s4 + $0x8] ss:$28 sps:$4 sm:$0xff]  }
  0xaf   :  { %2013 = vmatprep.subr.bf16.mxu0 %v4543_v57  ;;  %4288 = vmatprep.subr.bf16.mxu1 %v6588_v42  ;;  %v4624_v57 = vld [vmem:[%s6535_s4 + $0x1a0] ss:$28 sps:$4 sm:$0xff]  }
  0xb1   :  { %1960 = vmatmul.mubr.bf16.vlgmr.msra.gmra.mxu0 %v5766_v5  ;;  %2003 = vmatmul.mubr.bf16.vlgmr.msra.gmra.mxu1 %v5766_v5 }
  0xb2   :  { %2014 = vmatpush1.bf16.msra.mxu0 %v4541_v17  ;;  %4289 = vmatpush3.bf16.msra.mxu1 %v4544_v61  ;;  %v4627_v17 = vld [vmem:[%s6535_s4 + $0x164] ss:$28 sps:$4 sm:$0xff]  }
  0xb3   :  { %2015 = vmatprep.subr.bf16.mxu0 %v4547_v56  ;;  %4290 = vmatprep.subr.bf16.mxu1 %v6588_v42  ;;  %v4625_v61 = vld [vmem:[%s6535_s4 + $0x160] ss:$28 sps:$4 sm:$0xff]   ;;  %v4631_v56 = vld [vmem:[%s6535_s4 + $0x12c] ss:$28 sps:$4 sm:$0xff]  }
  0xb4   :  { %2045 = vmatprep.mubr.bf16.mxu0 %v6566_v59  ;;  %4304 = vmatprep.mubr.msk.bf16.mxu1 %vm4830_vm0, %v6588_v42 }
  0xb6   :  { %2016 = vmatpush1.bf16.msra.mxu0 %v4545_v6  ;;  %4291 = vmatpush3.bf16.msra.mxu1 %v4548_v3  ;;  %v4629_v6 = vld [vmem:[%s6535_s4 + $0x128] ss:$28 sps:$4 sm:$0xff]   ;;  %v4632_v3 = vld [vmem:[%s6535_s4 + $0x130] ss:$28 sps:$4 sm:$0xff]  }
  0xb7   :  { %2017 = vmatprep.subr.bf16.mxu0 %v4551_v25  ;;  %4292 = vmatprep.subr.bf16.mxu1 %v6588_v42  ;;  %v4635_v25 = vld [vmem:[%s6535_s4 + $0xf4] ss:$28 sps:$4 sm:$0xff]  }
  0xba   :  { %2018 = vmatpush1.bf16.msra.mxu0 %v4549_v34  ;;  %4293 = vmatpush3.bf16.msra.mxu1 %v4552_v63  ;;  %v4633_v34 = vld [vmem:[%s6535_s4 + $0xf0] ss:$28 sps:$4 sm:$0xff]   ;;  %v4636_v63 = vld [vmem:[%s6535_s4 + $0xf8] ss:$28 sps:$4 sm:$0xff]  }
  0xbb   :  { %2019 = vmatprep.subr.bf16.mxu0 %v4555_v10  ;;  %4294 = vmatprep.subr.bf16.mxu1 %v6588_v42  ;;  %v4639_v10 = vld [vmem:[%s6535_s4 + $0xbc] ss:$28 sps:$4 sm:$0xff]  }
  0xbe   :  { %2020 = vmatpush1.bf16.msra.mxu0 %v4553_v62  ;;  %4295 = vmatpush3.bf16.msra.mxu1 %v4556_v11  ;;  %v4637_v62 = vld [vmem:[%s6535_s4 + $0xb8] ss:$28 sps:$4 sm:$0xff]   ;;  %v4640_v11 = vld [vmem:[%s6535_s4 + $0xc0] ss:$28 sps:$4 sm:$0xff]  }
  0xbf   :  { %2021 = vmatprep.subr.bf16.mxu0 %v4559_v4  ;;  %4296 = vmatprep.subr.bf16.mxu1 %v6588_v42  ;;  %v4643_v4 = vld [vmem:[%s6535_s4 + $0x84] ss:$28 sps:$4 sm:$0xff]  }
  0xc2   :  { %2022 = vmatpush1.bf16.msra.mxu0 %v4557_v39  ;;  %4297 = vmatpush3.bf16.msra.mxu1 %v4560_v53  ;;  %v4641_v39 = vld [vmem:[%s6535_s4 + $0x80] ss:$28 sps:$4 sm:$0xff]   ;;  %v4644_v53 = vld [vmem:[%s6535_s4 + $0x88] ss:$28 sps:$4 sm:$0xff]  }
  0xc3   :  { %2023 = vmatprep.subr.bf16.mxu0 %v4563_v19  ;;  %4298 = vmatprep.subr.bf16.mxu1 %v6588_v42 }
  0xc6   :  { %2024 = vmatpush1.bf16.msra.mxu0 %v4561_v7  ;;  %4299 = vmatpush3.bf16.msra.mxu1 %v4564_v44  ;;  %v4647_v7 = vld [vmem:[%s6535_s4 + $0x4c] ss:$28 sps:$4 sm:$0xff]  }
  0xc7   :  { %2025 = vmatprep.subr.bf16.mxu0 %v4567_v20  ;;  %4300 = vmatprep.subr.bf16.mxu1 %v6588_v42  ;;  %v4645_v44 = vld [vmem:[%s6535_s4 + $0x48] ss:$28 sps:$4 sm:$0xff]   ;;  %v4648_v20 = vld [vmem:[%s6535_s4 + $0x50] ss:$28 sps:$4 sm:$0xff]  }
  0xca   :  { %2026 = vmatpush1.bf16.msra.mxu0 %v4565_v9  ;;  %4301 = vmatpush3.bf16.msra.mxu1 %v4568_v32  ;;  %v4651_v32 = vld [vmem:[%s6535_s4 + $0x14] ss:$28 sps:$4 sm:$0xff]  }
  0xcb   :  { %2027 = vmatprep.subr.bf16.mxu0 %v4571_v38  ;;  %4302 = vmatprep.subr.bf16.mxu1 %v6588_v42  ;;  %v4649_v38 = vld [vmem:[%s6535_s4 + $0x10] ss:$28 sps:$4 sm:$0xff]  }
  0xce   :  { %2028 = vmatpush1.bf16.msra.mxu0 %v4569_v22  ;;  %4303 = vmatpush3.bf16.msra.mxu1 %v4572_v54  ;;  %v4652_v22 = vld [vmem:[%s6535_s4 + $0x18] ss:$28 sps:$4 sm:$0xff]  }
  0xcf   :  { %2433 = vmatprep.subr.bf16.mxu0 %v4575_v52  ;;  %2476 = vmatprep.subr.bf16.mxu1 %v4578_v36  ;;  %v4655_v52 = vld [vmem:[%s6536_s5 + $0xe4] ss:$16 sps:$4 sm:$0xff]   ;;  %v4658_v36 = vld [vmem:[%s6536_s5 + $0xec] ss:$16 sps:$4 sm:$0xff]  }
  0xd1   :  { %2046 = vmatmul.mubr.bf16.vlgmr.msra.gmra.mxu0 %v5766_v5  ;;  %4305 = vmatmul.mubr.bf16.vlgmr.msra.gmra.mxu1 %v5766_v5  ;;  %v4628_v5 = vld [vmem:[%s6535_s4 + $0x168] ss:$28 sps:$4 sm:$0xff]  }
  0xd2   :  { %2434 = vmatpush1.bf16.msra.mxu0 %v4573_v1  ;;  %2477 = vmatpush1.bf16.msra.mxu1 %v4576_v58  ;;  %v4653_v1 = vld [vmem:[%s6536_s5 + $0xe0] ss:$16 sps:$4 sm:$0xff]   ;;  %v4656_v58 = vld [vmem:[%s6536_s5 + $0xe8] ss:$16 sps:$4 sm:$0xff]  }
  0xd3   :  { %2435 = vmatprep.subr.bf16.mxu0 %v4581_v18  ;;  %2478 = vmatprep.subr.bf16.mxu1 %v4584_v43  ;;  %v4664_v43 = vld [vmem:[%s6536_s5 + $0xcc] ss:$16 sps:$4 sm:$0xff]  }
  0xd4   :  { %2465 = vmatprep.mubr.bf16.mxu0 %v6566_v59  ;;  %2508 = vmatprep.mubr.bf16.mxu1 %v6566_v59 }
  0xd6   :  { %2436 = vmatpush1.bf16.msra.mxu0 %v4579_v33  ;;  %2479 = vmatpush1.bf16.msra.mxu1 %v4582_v16  ;;  %v4659_v16 = vld [vmem:[%s6536_s5 + $0xc0] ss:$16 sps:$4 sm:$0xff]  }
  0xd7   :  { %2437 = vmatprep.subr.bf16.mxu0 %v4587_v47  ;;  %2480 = vmatprep.subr.bf16.mxu1 %v4590_v13  ;;  %v4662_v47 = vld [vmem:[%s6536_s5 + $0xc8] ss:$16 sps:$4 sm:$0xff]  }
  0xda   :  { %2438 = vmatpush1.bf16.msra.mxu0 %v4585_v12  ;;  %2481 = vmatpush1.bf16.msra.mxu1 %v4588_v28  ;;  %v4667_v12 = vld [vmem:[%s6536_s5 + $0xa4] ss:$16 sps:$4 sm:$0xff]  }
  0xdb   :  { %2439 = vmatprep.subr.bf16.mxu0 %v4593_v27  ;;  %2482 = vmatprep.subr.bf16.mxu1 %v4596_v49  ;;  %v4665_v49 = vld [vmem:[%s6536_s5 + $0xa0] ss:$16 sps:$4 sm:$0xff]  }
  0xde   :  { %2440 = vmatpush1.bf16.msra.mxu0 %v4591_v0  ;;  %2483 = vmatpush1.bf16.msra.mxu1 %v4594_v8  ;;  %v4668_v0 = vld [vmem:[%s6536_s5 + $0xa8] ss:$16 sps:$4 sm:$0xff]  }
  0xdf   :  { %2441 = vmatprep.subr.bf16.mxu0 %v4599_v40  ;;  %2484 = vmatprep.subr.bf16.mxu1 %v4602_v21  ;;  %v4673_v40 = vld [vmem:[%s6536_s5 + $0x84] ss:$16 sps:$4 sm:$0xff]   ;;  %v4676_v21 = vld [vmem:[%s6536_s5 + $0x8c] ss:$16 sps:$4 sm:$0xff]  }
  0xe2   :  { %2442 = vmatpush1.bf16.msra.mxu0 %v4597_v35  ;;  %2485 = vmatpush1.bf16.msra.mxu1 %v4600_v23  ;;  %v4671_v23 = vld [vmem:[%s6536_s5 + $0x80] ss:$16 sps:$4 sm:$0xff]  }
  0xe3   :  { %2443 = vmatprep.subr.bf16.mxu0 %v4605_v48  ;;  %2486 = vmatprep.subr.bf16.mxu1 %v4608_v46  ;;  %v4674_v48 = vld [vmem:[%s6536_s5 + $0x88] ss:$16 sps:$4 sm:$0xff]   ;;  %v4679_v46 = vld [vmem:[%s6536_s5 + $0x64] ss:$16 sps:$4 sm:$0xff]  }
  0xe6   :  { %2444 = vmatpush1.bf16.msra.mxu0 %v4603_v55  ;;  %2487 = vmatpush1.bf16.msra.mxu1 %v4606_v14  ;;  %v4682_v55 = vld [vmem:[%s6536_s5 + $0x6c] ss:$16 sps:$4 sm:$0xff]  }
  0xe7   :  { %2445 = vmatprep.subr.bf16.mxu0 %v4611_v2  ;;  %2488 = vmatprep.subr.bf16.mxu1 %v4614_v30  ;;  %v4677_v2 = vld [vmem:[%s6536_s5 + $0x60] ss:$16 sps:$4 sm:$0xff]   ;;  %v4680_v30 = vld [vmem:[%s6536_s5 + $0x68] ss:$16 sps:$4 sm:$0xff]  }
  0xea   :  { %2446 = vmatpush1.bf16.msra.mxu0 %v4609_v60  ;;  %2489 = vmatpush1.bf16.msra.mxu1 %v4612_v45  ;;  %v4685_v60 = vld [vmem:[%s6536_s5 + $0x44] ss:$16 sps:$4 sm:$0xff]   ;;  %v4688_v45 = vld [vmem:[%s6536_s5 + $0x4c] ss:$16 sps:$4 sm:$0xff]  }
  0xeb   :  { %2447 = vmatprep.subr.bf16.mxu0 %v4617_v41  ;;  %2490 = vmatprep.subr.bf16.mxu1 %v4620_v37  ;;  %v4683_v37 = vld [vmem:[%s6536_s5 + $0x40] ss:$16 sps:$4 sm:$0xff]  }
  0xee   :  { %2448 = vmatpush1.bf16.msra.mxu0 %v4615_v15  ;;  %2491 = vmatpush1.bf16.msra.mxu1 %v4618_v29  ;;  %v4686_v15 = vld [vmem:[%s6536_s5 + $0x48] ss:$16 sps:$4 sm:$0xff]  }
  0xef   :  { %2519 = vmatprep.subr.bf16.mxu0 %v4623_v24  ;;  %4308 = vmatprep.subr.bf16.mxu1 %v6588_v42  ;;  %v4691_v24 = vld [vmem:[%s6536_s5 + $0x24] ss:$16 sps:$4 sm:$0xff]  }
  0xf1   :  { %2466 = vmatmul.mubr.bf16.vlgmr.msra.gmra.mxu0 %v5592_v50  ;;  %2509 = vmatmul.mubr.bf16.vlgmr.msra.gmra.mxu1 %v5592_v50  ;;  %v6008_v19 = vpop.f32.mrf.mxu1  ;;  %v6073_v28 = vpop.f32.mrf.mxu0 }
  0xf2   :  { %2520 = vmatpush1.bf16.msra.mxu0 %v4621_v51  ;;  %4309 = vmatpush3.bf16.msra.mxu1 %v4624_v57  ;;  %v4694_v51 = vld [vmem:[%s6536_s5 + $0x2c] ss:$16 sps:$4 sm:$0xff]   ;;  %v4689_v57 = vld [vmem:[%s6536_s5 + $0x20] ss:$16 sps:$4 sm:$0xff]  }
  0xf3   :  { %2521 = vmatprep.subr.bf16.mxu0 %v4627_v17  ;;  %4310 = vmatprep.subr.bf16.mxu1 %v6588_v42  ;;  %v6020_v9 = vpop.f32.mrf.mxu1  ;;  %v6089_v35 = vpop.f32.mrf.mxu0  ;;  %v4692_v17 = vld [vmem:[%s6536_s5 + $0x28] ss:$16 sps:$4 sm:$0xff]  }
  0xf4   :  { %2551 = vmatprep.mubr.bf16.mxu0 %v6566_v59  ;;  %4324 = vmatprep.mubr.msk.bf16.mxu1 %vm4830_vm0, %v6588_v42 }
  0xf5   :  { %v6032_v54 = vpop.f32.mrf.mxu1  ;;  %v6103_v14 = vpop.f32.mrf.mxu0 }
  0xf6   :  { %2522 = vmatpush1.bf16.msra.mxu0 %v4625_v61  ;;  %4311 = vmatpush3.bf16.msra.mxu1 %v4628_v5  ;;  %v4697_v5 = vld [vmem:[%s6536_s5 + $0x4] ss:$16 sps:$4 sm:$0xff]  }
  0xf7   :  { %2523 = vmatprep.subr.bf16.mxu0 %v4631_v56  ;;  %4312 = vmatprep.subr.bf16.mxu1 %v6588_v42  ;;  %v6047_v18 = vpop.f32.mrf.mxu1  ;;  %v6117_v41 = vpop.f32.mrf.mxu0  ;;  %v4700_v56 = vld [vmem:[%s6536_s5 + $0xc] ss:$16 sps:$4 sm:$0xff]  }
  0xfa   :  { %2524 = vmatpush1.bf16.msra.mxu0 %v4629_v6  ;;  %4313 = vmatpush3.bf16.msra.mxu1 %v4632_v3  ;;  %v4695_v6 = vld [vmem:[%s6536_s5] ss:$16 sps:$4 sm:$0xff]   ;;  %v4698_v3 = vld [vmem:[%s6536_s5 + $0x8] ss:$16 sps:$4 sm:$0xff]  }
  0xfb   :  { %2525 = vmatprep.subr.bf16.mxu0 %v4635_v25  ;;  %4314 = vmatprep.subr.bf16.mxu1 %v6588_v42  ;;  %v2704_v25 = vld [vmem:[%s6532_s1] sm:$0x3] }
  0xfe   :  { %2526 = vmatpush1.bf16.msra.mxu0 %v4633_v34  ;;  %4315 = vmatpush3.bf16.msra.mxu1 %v4636_v63  ;;  %v4703_v63 = vld [vmem:[%s6536_s5 + $0x1e4] ss:$16 sps:$4 sm:$0xff]  }
  0xff   :  { %2527 = vmatprep.subr.bf16.mxu0 %v4639_v10  ;;  %4316 = vmatprep.subr.bf16.mxu1 %v6588_v42  ;;  %v4706_v10 = vld [vmem:[%s6536_s5 + $0x1ec] ss:$16 sps:$4 sm:$0xff]  }
 0x102   :  { %2528 = vmatpush1.bf16.msra.mxu0 %v4637_v62  ;;  %4317 = vmatpush3.bf16.msra.mxu1 %v4640_v11  ;;  %v1333_v62 = vlaneseq  ;;  %v2705_v11 = vpack.c.bf16 %v2704_v25, %v2704_v25  ;;  %v4728_v25 = vld [vmem:[%s6536_s5 + $0x168] ss:$16 sps:$4 sm:$0xff]  }
 0x103   :  { %2529 = vmatprep.subr.bf16.mxu0 %v4643_v4  ;;  %4318 = vmatprep.subr.bf16.mxu1 %v6588_v42  ;;  %v4701_v4 = vld [vmem:[%s6536_s5 + $0x1e0] ss:$16 sps:$4 sm:$0xff]  }
 0x106   :  { %2530 = vmatpush1.bf16.msra.mxu0 %v4641_v39  ;;  %4319 = vmatpush3.bf16.msra.mxu1 %v4644_v53  ;;  %v4704_v39 = vld [vmem:[%s6536_s5 + $0x1e8] ss:$16 sps:$4 sm:$0xff]  }
 0x107   :  { %2531 = vmatprep.subr.bf16.mxu0 %v4647_v7  ;;  %4320 = vmatprep.subr.bf16.mxu1 %v6588_v42  ;;  %v4709_v7 = vld [vmem:[%s6536_s5 + $0x1c4] ss:$16 sps:$4 sm:$0xff]  }
 0x10a   :  { %2532 = vmatpush1.bf16.msra.mxu0 %v4645_v44  ;;  %4321 = vmatpush3.bf16.msra.mxu1 %v4648_v20  ;;  %v4712_v44 = vld [vmem:[%s6536_s5 + $0x1cc] ss:$16 sps:$4 sm:$0xff]  }
 0x10b   :  { %2533 = vmatprep.subr.bf16.mxu0 %v4651_v32  ;;  %4322 = vmatprep.subr.bf16.mxu1 %v6588_v42  ;;  %v4661_v42 = vld [vmem:[%s6536_s5 + $0xc4] ss:$16 sps:$4 sm:$0xff]   ;;  %v6178_v32 = vshrl.u32 %v1333_v62, 7 }
 0x10c   :  { %v4733_v62 = vld [vmem:[%s6536_s5 + $0x144] ss:$16 sps:$4 sm:$0xff]  }
 0x10d   :  { %vm1337_vm8 = vcmp.ge.s32.totalorder %v6178_v32, 3  ;;  %vm1346_vm9 = vcmp.ge.s32.totalorder %v6178_v32, 2  ;;  %vm1355_vm10 = vcmp.ge.s32.totalorder %v6178_v32, 1  ;;  %vm1366_vm11 = vcmp.lt.s32.totalorder %v6178_v32, 7 }
 0x10e   :  { %2534 = vmatpush1.bf16.msra.mxu0 %v4649_v38  ;;  %4323 = vmatpush3.bf16.msra.mxu1 %v4652_v22  ;;  %vm1375_vm12 = vcmp.lt.s32.totalorder %v6178_v32, 6  ;;  %vm1384_vm13 = vcmp.lt.s32.totalorder %v6178_v32, 5 }
 0x10f   :  { %2920 = vmatprep.subr.bf16.mxu0 %v4655_v52  ;;  %2961 = vmatprep.subr.bf16.mxu1 %v4658_v36  ;;  %v4707_v36 = vld [vmem:[%s6536_s5 + $0x1c0] ss:$16 sps:$4 sm:$0xff]  }
 0x111   :  { %v6055_v33 = vpop.f32.mrf.mxu1  ;;  %2552 = vmatmul.mubr.bf16.vlgmr.msra.gmra.mxu0 %v5592_v50  ;;  %4325 = vmatmul.mubr.bf16.vlgmr.msra.gmra.mxu1 %v5592_v50  ;;  %v4670_v50 = vld [vmem:[%s6536_s5 + $0xac] ss:$16 sps:$4 sm:$0xff]   ;;  %v6125_v29 = vpop.f32.mrf.mxu0 }
 0x112   :  { %2921 = vmatpush1.bf16.msra.mxu0 %v4653_v1  ;;  %2962 = vmatpush1.bf16.msra.mxu1 %v4656_v58  ;;  %v4710_v1 = vld [vmem:[%s6536_s5 + $0x1c8] ss:$16 sps:$4 sm:$0xff]  }
 0x113   :  { %v4266_v13 = vpop.f32.mrf.mxu1  ;;  %2922 = vmatprep.subr.bf16.mxu0 %v4661_v42  ;;  %2963 = vmatprep.subr.bf16.mxu1 %v4664_v43  ;;  %v6139_v61 = vpop.f32.mrf.mxu0  ;;  %v4715_v43 = vld [vmem:[%s6536_s5 + $0x1a4] ss:$16 sps:$4 sm:$0xff]  }
 0x114   :  { %2952 = vmatprep.mubr.bf16.mxu0 %v6566_v59  ;;  %2993 = vmatprep.mubr.bf16.mxu1 %v6566_v59 }
 0x115   :  { %v6075_v27 = vpop.f32.mrf.mxu1  ;;  %v6156_v34 = vpop.f32.mrf.mxu0 }
 0x116   :  { %2923 = vmatpush1.bf16.msra.mxu0 %v4659_v16  ;;  %2964 = vmatpush1.bf16.msra.mxu1 %v4662_v47 }
 0x117   :  { %v4267_v8 = vpop.f32.mrf.mxu1  ;;  %2924 = vmatprep.subr.bf16.mxu0 %v4667_v12  ;;  %2965 = vmatprep.subr.bf16.mxu1 %v4670_v50  ;;  %v6170_v53 = vpop.f32.mrf.mxu0 }
 0x118   :  { %v4716_v8 = vld [vmem:[%s6536_s5 + $0x1a8] ss:$16 sps:$4 sm:$0xff]  }
 0x11a   :  { %2925 = vmatpush1.bf16.msra.mxu0 %v4665_v49  ;;  %2966 = vmatpush1.bf16.msra.mxu1 %v4668_v0  ;;  %v4713_v0 = vld [vmem:[%s6536_s5 + $0x1a0] ss:$16 sps:$4 sm:$0xff]  }
 0x11b   :  { %2926 = vmatprep.subr.bf16.mxu0 %v4673_v40  ;;  %2967 = vmatprep.subr.bf16.mxu1 %v4676_v21 }
 0x11e   :  { %2927 = vmatpush1.bf16.msra.mxu0 %v4671_v23  ;;  %2968 = vmatpush1.bf16.msra.mxu1 %v4674_v48  ;;  %v4724_v23 = vld [vmem:[%s6536_s5 + $0x18c] ss:$16 sps:$4 sm:$0xff]  }
 0x11f   :  { %2928 = vmatprep.subr.bf16.mxu0 %v4679_v46  ;;  %2969 = vmatprep.subr.bf16.mxu1 %v4682_v55 }
 0x122   :  { %2929 = vmatpush1.bf16.msra.mxu0 %v4677_v2  ;;  %2970 = vmatpush1.bf16.msra.mxu1 %v4680_v30  ;;  %v4719_v2 = vld [vmem:[%s6536_s5 + $0x180] ss:$16 sps:$4 sm:$0xff]  }
 0x123   :  { %2930 = vmatprep.subr.bf16.mxu0 %v4685_v60  ;;  %2971 = vmatprep.subr.bf16.mxu1 %v4688_v45 }
 0x126   :  { %2931 = vmatpush1.bf16.msra.mxu0 %v4683_v37  ;;  %2972 = vmatpush1.bf16.msra.mxu1 %v4686_v15  ;;  %v4722_v37 = vld [vmem:[%s6536_s5 + $0x188] ss:$16 sps:$4 sm:$0xff]  }
 0x127   :  { %2932 = vmatprep.subr.bf16.mxu0 %v4691_v24  ;;  %2973 = vmatprep.subr.bf16.mxu1 %v4694_v51  ;;  %v4730_v51 = vld [vmem:[%s6536_s5 + $0x16c] ss:$16 sps:$4 sm:$0xff]  }
 0x12a   :  { %2933 = vmatpush1.bf16.msra.mxu0 %v4689_v57  ;;  %2974 = vmatpush1.bf16.msra.mxu1 %v4692_v17 }
 0x12b   :  { %2934 = vmatprep.subr.bf16.mxu0 %v4697_v5  ;;  %2975 = vmatprep.subr.bf16.mxu1 %v4700_v56 }
 0x12e   :  { %2935 = vmatpush1.bf16.msra.mxu0 %v4695_v6  ;;  %2976 = vmatpush1.bf16.msra.mxu1 %v4698_v3  ;;  %v4725_v3 = vld [vmem:[%s6536_s5 + $0x160] ss:$16 sps:$4 sm:$0xff]  }
 0x12f   :  { %3250 = vmatprep.subr.bf16.mxu0 %v4703_v63  ;;  %3291 = vmatprep.subr.bf16.mxu1 %v4706_v10 }
 0x131   :  { %v1197_v20 = vpop.f32.mrf.mxu0  ;;  %v1240_v38 = vpop.f32.mrf.mxu1  ;;  %2953 = vmatmul.mubr.bf16.vlgmr.msra.gmra.mxu0 %v2705_v11  ;;  %2994 = vmatmul.mubr.bf16.vlgmr.msra.gmra.mxu1 %v2705_v11  ;;  %v4736_v11 = vld [vmem:[%s6536_s5 + $0x14c] ss:$16 sps:$4 sm:$0xff]  }
 0x132   :  { %v1198_v22 = vadd.f32 %v1197_v20, %v6073_v28  ;;  %v1241_v52 = vadd.f32 %v1240_v38, %v6008_v19  ;;  %3251 = vmatpush1.bf16.msra.mxu0 %v4701_v4  ;;  %3292 = vmatpush1.bf16.msra.mxu1 %v4704_v39  ;;  %v4718_v19 = vld [vmem:[%s6536_s5 + $0x1ac] ss:$16 sps:$4 sm:$0xff]   ;;  %v4731_v39 = vld [vmem:[%s6536_s5 + $0x140] ss:$16 sps:$4 sm:$0xff]   ;;  %v4740_v38 = vld [vmem:[%s6536_s5 + $0x128] ss:$16 sps:$4 sm:$0xff]  }
 0x133   :  { %v1199_v58 = vpop.f32.mrf.mxu0  ;;  %v1242_v42 = vpop.f32.mrf.mxu1  ;;  %3252 = vmatprep.subr.bf16.mxu0 %v4709_v7  ;;  %3293 = vmatprep.subr.bf16.mxu1 %v4712_v44  ;;  %v4739_v7 = vld [vmem:[%s6536_s5 + $0x124] ss:$16 sps:$4 sm:$0xff]   ;;  %v4742_v44 = vld [vmem:[%s6536_s5 + $0x12c] ss:$16 sps:$4 sm:$0xff]   ;;  %v4737_v20 = vld [vmem:[%s6536_s5 + $0x120] ss:$16 sps:$4 sm:$0xff]  }
 0x134   :  { %v1335_v16 = vrot.slane %v1198_v22, 5  ;;  %v1200_v47 = vadd.f32 %v1199_v58, %v6089_v35  ;;  %3282 = vmatprep.mubr.bf16.mxu0 %v6566_v59  ;;  %3323 = vmatprep.mubr.bf16.mxu1 %v6566_v59  ;;  %v1353_v50 = vrot.slane %v1241_v52, 7  ;;  %v4721_v35 = vld [vmem:[%s6536_s5 + $0x184] ss:$16 sps:$4 sm:$0xff]   ;;  %v1243_v15 = vadd.f32 %v1242_v42, %v6020_v9  ;;  %v4748_v52 = vld [vmem:[%s6536_s5 + $0x10c] ss:$16 sps:$4 sm:$0xff]  }
 0x135   :  { %v1201_v13 = vpop.f32.mrf.mxu0  ;;  %v1244_v12 = vpop.f32.mrf.mxu1  ;;  %v4745_v22 = vld [vmem:[%s6536_s5 + $0x104] ss:$16 sps:$4 sm:$0xff]  }
 0x136   :  { %v1344_v28 = vrot.slane %v1200_v47, 6  ;;  %v1202_v49 = vadd.f32 %v1201_v13, %v6103_v14  ;;  %3253 = vmatpush1.bf16.msra.mxu0 %v4707_v36  ;;  %3294 = vmatpush1.bf16.msra.mxu1 %v4710_v1  ;;  %v1245_v40 = vadd.f32 %v1244_v12, %v6032_v54  ;;  %v1340_v48 = vsel %vm1337_vm8, %v1335_v16, 0.0  ;;  %v4743_v36 = vld [vmem:[%s6536_s5 + $0x100] ss:$16 sps:$4 sm:$0xff]   ;;  %v4746_v1 = vld [vmem:[%s6536_s5 + $0x108] ss:$16 sps:$4 sm:$0xff]  }
 0x137   :  { %v1203_v21 = vpop.f32.mrf.mxu0  ;;  %3254 = vmatprep.subr.bf16.mxu0 %v4715_v43  ;;  %3295 = vmatprep.subr.bf16.mxu1 %v4718_v19  ;;  %v1358_v30 = vsel %vm1355_vm10, %v1353_v50, 0.0  ;;  %v1246_v5 = vpop.f32.mrf.mxu1 }
 0x138   :  { %v1349_v46 = vsel %vm1346_vm9, %v1344_v28, 0.0  ;;  %v1336_v55 = vrot.slane %v1202_v49, 5  ;;  %v1204_v54 = vadd.f32 %v1203_v21, %v6117_v41  ;;  %v1354_v60 = vrot.slane %v1245_v40, 7  ;;  %v4727_v41 = vld [vmem:[%s6536_s5 + $0x164] ss:$16 sps:$4 sm:$0xff]  }
 0x139   :  { %v1351_v14 = vadd.f32 %v1349_v46, %v1340_v48  ;;  %v1247_v63 = vadd.f32 %v1246_v5, %v6047_v18  ;;  %v4734_v18 = vld [vmem:[%s6536_s5 + $0x148] ss:$16 sps:$4 sm:$0xff]  }
 0x13a   :  { %v1345_v45 = vrot.slane %v1204_v54, 6  ;;  %3255 = vmatpush1.bf16.msra.mxu0 %v4713_v0  ;;  %3296 = vmatpush1.bf16.msra.mxu1 %v4716_v8  ;;  %v1341_v57 = vsel %vm1337_vm8, %v1336_v55, 0.0  ;;  %v1359_v6 = vsel %vm1355_vm10, %v1354_v60, 0.0  ;;  %v1391_v55 = vstv %s6283_s3 }
 0x13b   :  { %v1360_v24 = vadd.f32 %v1358_v30, %v1351_v14  ;;  %3256 = vmatprep.subr.bf16.mxu0 %v4721_v35  ;;  %3297 = vmatprep.subr.bf16.mxu1 %v4724_v23 }
 0x13c   :  { %v1350_v17 = vsel %vm1346_vm9, %v1345_v45, 0.0 }
 0x13d   :  { %v1362_v56 = vadd.f32 %v1360_v24, %v1243_v15  ;;  %v1352_v9 = vadd.f32 %v1350_v17, %v1341_v57 }
 0x13e   :  { %3257 = vmatpush1.bf16.msra.mxu0 %v4719_v2  ;;  %3298 = vmatpush1.bf16.msra.mxu1 %v4722_v37 }
 0x13f   :  { %v1361_v10 = vadd.f32 %v1359_v6, %v1352_v9  ;;  %3258 = vmatprep.subr.bf16.mxu0 %v4727_v41  ;;  %3299 = vmatprep.subr.bf16.mxu1 %v4730_v51  ;;  %v4751_v9 = vld [vmem:[%s6536_s5 + $0x2e4] ss:$16 sps:$4 sm:$0xff]   ;;  %v4754_v6 = vld [vmem:[%s6536_s5 + $0x2ec] ss:$16 sps:$4 sm:$0xff]  }
 0x141   :  { %v1363_v4 = vadd.f32 %v1361_v10, %v1247_v63 }
 0x142   :  { %3259 = vmatpush1.bf16.msra.mxu0 %v4725_v3  ;;  %3300 = vmatpush1.bf16.msra.mxu1 %v4728_v25  ;;  %v6589_v25 = vld [vmem:[#allocation6_spill] sm:$0xff] }
 0x143   :  { %3260 = vmatprep.subr.bf16.mxu0 %v4733_v62  ;;  %3301 = vmatprep.subr.bf16.mxu1 %v4736_v11 }
 0x146   :  { %3261 = vmatpush1.bf16.msra.mxu0 %v4731_v39  ;;  %3302 = vmatpush1.bf16.msra.mxu1 %v4734_v18 }
 0x147   :  { %3262 = vmatprep.subr.bf16.mxu0 %v4739_v7  ;;  %3303 = vmatprep.subr.bf16.mxu1 %v4742_v44 }
 0x14a   :  { %3263 = vmatpush1.bf16.msra.mxu0 %v4737_v20  ;;  %3304 = vmatpush1.bf16.msra.mxu1 %v4740_v38 }
 0x14b   :  { %3264 = vmatprep.subr.bf16.mxu0 %v4745_v22  ;;  %3305 = vmatprep.subr.bf16.mxu1 %v4748_v52 }
 0x14e   :  { %3265 = vmatpush1.bf16.msra.mxu0 %v4743_v36  ;;  %3306 = vmatpush1.bf16.msra.mxu1 %v4746_v1 }
 0x14f   :  { %3581 = vmatprep.subr.bf16.mxu0 %v4751_v9  ;;  %3622 = vmatprep.subr.bf16.mxu1 %v4754_v6  ;;  %v4784_v9 = vld [vmem:[%s6536_s5 + $0x24c] ss:$16 sps:$4 sm:$0xff]  }
 0x151   :  { %v1283_v58 = vpop.f32.mrf.mxu0  ;;  %v1326_v42 = vpop.f32.mrf.mxu1 }
 0x152   :  { %v1284_v43 = vadd.f32 %v1283_v58, %v6125_v29  ;;  %v1327_v19 = vadd.f32 %v1326_v42, %v6055_v33 }
 0x153   :  { %v1285_v16 = vpop.f32.mrf.mxu0  ;;  %v4286_v47 = vpop.f32.mrf.mxu1 }
 0x154   :  { %v1364_v13 = vrot.slane %v1284_v43, 1  ;;  %v1286_v12 = vadd.f32 %v1285_v16, %v6139_v61  ;;  %v1382_v0 = vrot.slane %v1327_v19, 3 }
 0x155   :  { %v1287_v50 = vpop.f32.mrf.mxu0  ;;  %v1329_v28 = vpop.f32.mrf.mxu1 }
 0x156   :  { %v1369_v49 = vsel %vm1366_vm11, %v1364_v13, 0.0  ;;  %v1373_v8 = vrot.slane %v1286_v12, 2  ;;  %v1288_v29 = vadd.f32 %v1287_v50, %v6156_v34  ;;  %v1330_v40 = vadd.f32 %v1329_v28, %v6075_v27 }
 0x157   :  { %v1371_v33 = vadd.f32 %v1369_v49, %v1362_v56  ;;  %v1289_v21 = vpop.f32.mrf.mxu0  ;;  %v4287_v35 = vpop.f32.mrf.mxu1  ;;  %v1387_v54 = vsel %vm1384_vm13, %v1382_v0, 0.0 }
 0x158   :  { %v1378_v61 = vsel %vm1375_vm12, %v1373_v8, 0.0  ;;  %v1365_v23 = vrot.slane %v1288_v29, 1  ;;  %v1290_v48 = vadd.f32 %v1289_v21, %v6170_v53  ;;  %v1383_v14 = vrot.slane %v1330_v40, 3  ;;  %v4749_v35 = vld [vmem:[%s6536_s5 + $0x2e0] ss:$16 sps:$4 sm:$0xff]  }
 0x159   :  { %v1380_v46 = vadd.f32 %v1378_v61, %v1371_v33  ;;  %v4752_v61 = vld [vmem:[%s6536_s5 + $0x2e8] ss:$16 sps:$4 sm:$0xff]  }
 0x15a   :  { %v1370_v34 = vsel %vm1366_vm11, %v1365_v23, 0.0  ;;  %v1374_v2 = vrot.slane %v1290_v48, 2  ;;  %v1388_v53 = vsel %vm1384_vm13, %v1383_v14, 0.0  ;;  %v4757_v48 = vld [vmem:[%s6536_s5 + $0x2c4] ss:$16 sps:$4 sm:$0xff]  }
 0x15b   :  { %v1389_v30 = vadd.f32 %v1387_v54, %v1380_v46  ;;  %v1372_v27 = vadd.f32 %v1370_v34, %v1363_v4  ;;  %v6590_v4 = vld [vmem:[#allocation7_spill] sm:$0xff]  ;;  %v4760_v46 = vld [vmem:[%s6536_s5 + $0x2cc] ss:$16 sps:$4 sm:$0xff]   ;;  %v4758_v34 = vld [vmem:[%s6536_s5 + $0x2c8] ss:$16 sps:$4 sm:$0xff]  }
 0x15c   :  { %v1379_v60 = vsel %vm1375_vm12, %v1374_v2, 0.0  ;;  %v4755_v54 = vld [vmem:[%s6536_s5 + $0x2c0] ss:$16 sps:$4 sm:$0xff]   ;;  %v4763_v14 = vld [vmem:[%s6536_s5 + $0x2a4] ss:$16 sps:$4 sm:$0xff]  }
 0x15d   :  { %v1392_v45 = vadd.f32 %v1391_v55, %v1389_v30  ;;  %v1381_v37 = vadd.f32 %v1379_v60, %v1372_v27  ;;  %v4766_v2 = vld [vmem:[%s6536_s5 + $0x2ac] ss:$16 sps:$4 sm:$0xff]   ;;  %v4761_v27 = vld [vmem:[%s6536_s5 + $0x2a0] ss:$16 sps:$4 sm:$0xff]   ;;  %v4764_v60 = vld [vmem:[%s6536_s5 + $0x2a8] ss:$16 sps:$4 sm:$0xff]  }
 0x15f   :  { %v3867_v15 = vmul.f32 -1.442695, %v1392_v45  ;;  %v1390_v24 = vadd.f32 %v1388_v53, %v1381_v37  ;;  %v4769_v45 = vld [vmem:[%s6536_s5 + $0x284] ss:$16 sps:$4 sm:$0xff]  }
 0x161   :  { %4797 = vpow2.f32 %v3867_v15  ;;  %v1393_v41 = vadd.f32 %v1391_v55, %v1390_v24  ;;  %v4767_v15 = vld [vmem:[%s6536_s5 + $0x280] ss:$16 sps:$4 sm:$0xff]   ;;  %v4770_v24 = vld [vmem:[%s6536_s5 + $0x288] ss:$16 sps:$4 sm:$0xff]  }
 0x163   :  { %v3868_v51 = vmul.f32 -1.442695, %v1393_v41  ;;  %v4775_v41 = vld [vmem:[%s6536_s5 + $0x264] ss:$16 sps:$4 sm:$0xff]  }
 0x165   :  { %4799 = vpow2.f32 %v3868_v51  ;;  %v4778_v51 = vld [vmem:[%s6536_s5 + $0x26c] ss:$16 sps:$4 sm:$0xff]  }
 0x16e   :  { %v4798_v57 = vpop.eup %4797 }
 0x16f   :  { %v1400_v17 = vadd.f32 1.0, %v4798_v57 }
 0x171   :  { %4801 = vrcp.f32 %v1400_v17  ;;  %v6314_v11 = vpop.f32.mrf.mxu1  ;;  %v6325_v0 = vpop.f32.mrf.mxu0  ;;  %v4773_v17 = vld [vmem:[%s6536_s5 + $0x260] ss:$16 sps:$4 sm:$0xff]  }
 0x172   :  { %v4800_v5 = vpop.eup %4799 }
 0x173   :  { %v1401_v56 = vadd.f32 1.0, %v4800_v5  ;;  %v6317_v20 = vpop.f32.mrf.mxu1  ;;  %v6342_v55 = vpop.f32.mrf.mxu0  ;;  %v4776_v5 = vld [vmem:[%s6536_s5 + $0x268] ss:$16 sps:$4 sm:$0xff]  }
 0x175   :  { %4803 = vrcp.f32 %v1401_v56  ;;  %v6319_v1 = vpop.f32.mrf.mxu1  ;;  %v6356_v30 = vpop.f32.mrf.mxu0  ;;  %v4781_v56 = vld [vmem:[%s6536_s5 + $0x244] ss:$16 sps:$4 sm:$0xff]  }
 0x177   :  { %v6321_v16 = vpop.f32.mrf.mxu1  ;;  %v6372_v37 = vpop.f32.mrf.mxu0 }
 0x17e   :  { %v4802_v3 = vpop.eup %4801 }
 0x17f   :  { %v1406_v63 = vmul.f32 %v4802_v3, %v6589_v25  ;;  %v4779_v3 = vld [vmem:[%s6536_s5 + $0x240] ss:$16 sps:$4 sm:$0xff]   ;;  %v4782_v25 = vld [vmem:[%s6536_s5 + $0x248] ss:$16 sps:$4 sm:$0xff]  }
 0x181   :  { %v1408_v10 = vrot.slane %v1406_v63, 4 }
 0x182   :  { %v4804_v62 = vpop.eup %4803 }
 0x183   :  { %v1407_v39 = vmul.f32 %v4804_v62, %v6590_v4  ;;  %v1409_v18 = vadd.f32 %v1408_v10, %v1406_v63  ;;  %v4787_v63 = vld [vmem:[%s6536_s5 + $0x224] ss:$16 sps:$4 sm:$0xff]   ;;  %v4790_v10 = vld [vmem:[%s6536_s5 + $0x22c] ss:$16 sps:$4 sm:$0xff]   ;;  %v4785_v4 = vld [vmem:[%s6536_s5 + $0x220] ss:$16 sps:$4 sm:$0xff]  }
 0x185   :  { %v1410_v7 = vrot.slane %v1409_v18, 2  ;;  %v1414_v44 = vrot.slane %v1407_v39, 4 }
 0x187   :  { %v1411_v38 = vadd.f32 %v1410_v7, %v1409_v18  ;;  %v1415_v22 = vadd.f32 %v1414_v44, %v1407_v39  ;;  %v4788_v39 = vld [vmem:[%s6536_s5 + $0x228] ss:$16 sps:$4 sm:$0xff]   ;;  %v4793_v18 = vld [vmem:[%s6536_s5 + $0x204] ss:$16 sps:$4 sm:$0xff]   ;;  %v4796_v7 = vld [vmem:[%s6536_s5 + $0x20c] ss:$16 sps:$4 sm:$0xff]  }
 0x189   :  { %v1412_v52 = vrot.slane %v1411_v38, 1  ;;  %v1416_v36 = vrot.slane %v1415_v22, 2 }
 0x18b   :  { %v1413_v58 = vadd.f32 %v1412_v52, %v1411_v38  ;;  %v1417_v42 = vadd.f32 %v1416_v36, %v1415_v22 }
 0x18d   :  { %v1418_v43 = vrot.slane %v1417_v42, 1  ;;  %v1420_v19 = vmul.f32 0.125, %v1413_v58 }
 0x18f   :  { %v1419_v47 = vadd.f32 %v1418_v43, %v1417_v42  ;;  %v3025_v50 = vpack.c.bf16 %v1420_v19, %v1420_v19  ;;  %v4791_v42 = vld [vmem:[%s6536_s5 + $0x200] ss:$16 sps:$4 sm:$0xff]   ;;  %v4794_v43 = vld [vmem:[%s6536_s5 + $0x208] ss:$16 sps:$4 sm:$0xff]  }
 0x191   :  { %v6323_v13 = vpop.f32.mrf.mxu1  ;;  %v1421_v12 = vmul.f32 0.125, %v1419_v47  ;;  %v3085_v29 = vunpack.c.l.b16 %v3025_v50  ;;  %v6374_v53 = vpop.f32.mrf.mxu0 }
 0x193   :  { %v4306_v28 = vpop.f32.mrf.mxu1  ;;  %v3026_v49 = vpack.c.bf16 %v1421_v12, %v1421_v12  ;;  %v6388_v57 = vpop.f32.mrf.mxu0 }
 0x195   :  { %v6327_v8 = vpop.f32.mrf.mxu1  ;;  %v3086_v33 = vunpack.c.l.b16 %v3026_v49  ;;  %v6402_v6 = vpop.f32.mrf.mxu0 }
 0x197   :  { %v4307_v40 = vpop.f32.mrf.mxu1  ;;  %v3087_v21 = vsel %vm1616_vm1, %v3086_v33, %v3085_v29  ;;  %v6416_v62 = vpop.f32.mrf.mxu0 }
 0x198   :  { %v3088_v23 = vpack.c.b16 %v3087_v21, %v3087_v21 }
 0x19a   :  { %3283 = vmatmul.mubr.bf16.vlgmr.msra.gmra.mxu0 %v3088_v23  ;;  %3324 = vmatmul.mubr.bf16.vlgmr.msra.gmra.mxu1 %v3088_v23 }
 0x19b   :  { %3582 = vmatpush1.bf16.msra.mxu0 %v4749_v35  ;;  %3623 = vmatpush1.bf16.msra.mxu1 %v4752_v61 }
 0x19c   :  { %3583 = vmatprep.subr.bf16.mxu0 %v4757_v48  ;;  %3624 = vmatprep.subr.bf16.mxu1 %v4760_v46 }
 0x19d   :  { %3613 = vmatprep.mubr.bf16.mxu0 %v6566_v59  ;;  %3654 = vmatprep.mubr.bf16.mxu1 %v6566_v59  ;;  %v4772_v59 = vld [vmem:[%s6536_s5 + $0x28c] ss:$16 sps:$4 sm:$0xff]   ;;  %s6456_s5 = sld [smem:[#allocation3 + $0x1]] }
 0x19f   :  { %3584 = vmatpush1.bf16.msra.mxu0 %v4755_v54  ;;  %3625 = vmatpush1.bf16.msra.mxu1 %v4758_v34 }
 0x1a0   :  { %3585 = vmatprep.subr.bf16.mxu0 %v4763_v14  ;;  %3626 = vmatprep.subr.bf16.mxu1 %v4766_v2 }
 0x1a3   :  { %3586 = vmatpush1.bf16.msra.mxu0 %v4761_v27  ;;  %3627 = vmatpush1.bf16.msra.mxu1 %v4764_v60 }
 0x1a4   :  { %3587 = vmatprep.subr.bf16.mxu0 %v4769_v45  ;;  %3628 = vmatprep.subr.bf16.mxu1 %v4772_v59 }
 0x1a7   :  { %3588 = vmatpush1.bf16.msra.mxu0 %v4767_v15  ;;  %3629 = vmatpush1.bf16.msra.mxu1 %v4770_v24 }
 0x1a8   :  { %3589 = vmatprep.subr.bf16.mxu0 %v4775_v41  ;;  %3630 = vmatprep.subr.bf16.mxu1 %v4778_v51 }
 0x1ab   :  { %3590 = vmatpush1.bf16.msra.mxu0 %v4773_v17  ;;  %3631 = vmatpush1.bf16.msra.mxu1 %v4776_v5 }
 0x1ac   :  { %3591 = vmatprep.subr.bf16.mxu0 %v4781_v56  ;;  %3632 = vmatprep.subr.bf16.mxu1 %v4784_v9 }
 0x1af   :  { %3592 = vmatpush1.bf16.msra.mxu0 %v4779_v3  ;;  %3633 = vmatpush1.bf16.msra.mxu1 %v4782_v25 }
 0x1b0   :  { %3593 = vmatprep.subr.bf16.mxu0 %v4787_v63  ;;  %3634 = vmatprep.subr.bf16.mxu1 %v4790_v10 }
 0x1b1   :  { %v2467_v44 = vpop.f32.mrf.mxu0  ;;  %v2510_v38 = vpop.f32.mrf.mxu1 }
 0x1b2   :  { %v2468_v22 = vadd.f32 %v2467_v44, %v6325_v0  ;;  %v2511_v52 = vadd.f32 %v2510_v38, %v6314_v11  ;;  %v2641_v44 = vstv %s6456_s5 }
 0x1b3   :  { %v2469_v36 = vpop.f32.mrf.mxu0  ;;  %v2512_v58 = vpop.f32.mrf.mxu1  ;;  %3594 = vmatpush1.bf16.msra.mxu0 %v4785_v4  ;;  %3635 = vmatpush1.bf16.msra.mxu1 %v4788_v39 }
 0x1b4   :  { %v2603_v19 = vrot.slane %v2468_v22, 5  ;;  %v2470_v47 = vadd.f32 %v2469_v36, %v6342_v55  ;;  %3595 = vmatprep.subr.bf16.mxu0 %v4793_v18  ;;  %3636 = vmatprep.subr.bf16.mxu1 %v4796_v7  ;;  %v2615_v11 = vrot.slane %v2511_v52, 7 }
 0x1b5   :  { %v2471_v12 = vpop.f32.mrf.mxu0  ;;  %v2514_v50 = vpop.f32.mrf.mxu1 }
 0x1b6   :  { %v2609_v28 = vrot.slane %v2470_v47, 6  ;;  %v2472_v49 = vadd.f32 %v2471_v12, %v6356_v30  ;;  %v2515_v0 = vadd.f32 %v2514_v50, %v6319_v1  ;;  %v2605_v33 = vsel %vm1337_vm8, %v2603_v19, 0.0 }
 0x1b7   :  { %v2473_v29 = vpop.f32.mrf.mxu0  ;;  %3596 = vmatpush1.bf16.msra.mxu0 %v4791_v42  ;;  %3637 = vmatpush1.bf16.msra.mxu1 %v4794_v43  ;;  %v2617_v23 = vsel %vm1355_vm10, %v2615_v11, 0.0  ;;  %v2513_v1 = vadd.f32 %v2512_v58, %v6317_v20  ;;  %v2516_v14 = vpop.f32.mrf.mxu1  ;;  %v2738_v11 = vld [vmem:[%s6537_s6] sm:$0xf] }
 0x1b8   :  { %v2611_v40 = vsel %vm1346_vm9, %v2609_v28, 0.0  ;;  %v2604_v21 = vrot.slane %v2472_v49, 5  ;;  %v2474_v35 = vadd.f32 %v2473_v29, %v6372_v37  ;;  %v2616_v48 = vrot.slane %v2515_v0, 7 }
 0x1b9   :  { %v2613_v61 = vadd.f32 %v2611_v40, %v2605_v33  ;;  %v2517_v60 = vadd.f32 %v2516_v14, %v6321_v16  ;;  %v6481_v28 = vsub.s32 0, %v6178_v32  ;;  %v6484_v49 = vsub.s32 2, %v6178_v32 }
 0x1ba   :  { %v2610_v46 = vrot.slane %v2474_v35, 6  ;;  %v2606_v54 = vsel %vm1337_vm8, %v2604_v21, 0.0  ;;  %v2618_v27 = vsel %vm1355_vm10, %v2616_v48, 0.0  ;;  %v6487_v0 = vsub.s32 1, %v6178_v32 }
 0x1bb   :  { %v2619_v55 = vadd.f32 %v2617_v23, %v2613_v61  ;;  %v2743_v33 = vrot.slane %v2738_v11, %v6481_v28  ;;  %v2751_v40 = vrot.slane %v2738_v11, %v6484_v49  ;;  %v4831_v21 = vmov 1983009808  }
 0x1bc   :  { %v2612_v34 = vsel %vm1346_vm9, %v2610_v46, 0.0  ;;  %v3009_v35 = vunpack.c.l.s4 %v4831_v21  ;;  %v6492_v61 = vsub.s32 3, %v6178_v32  ;;  %v2747_v48 = vrot.slane %v2738_v11, %v6487_v0 }
 0x1bd   :  { %v2621_v2 = vadd.f32 %v2619_v55, %v2513_v1  ;;  %v2614_v30 = vadd.f32 %v2612_v34, %v2606_v54 }
 0x1be   :  { %v2755_v46 = vrot.slane %v2738_v11, %v6492_v61 }
 0x1bf   :  { %v2620_v45 = vadd.f32 %v2618_v27, %v2614_v30 }
 0x1c1   :  { %v2622_v59 = vadd.f32 %v2620_v45, %v2517_v60 }
 0x1d1   :  { %v2553_v37 = vpop.f32.mrf.mxu0  ;;  %v2596_v15 = vpop.f32.mrf.mxu1 }
 0x1d2   :  { %v2554_v20 = vadd.f32 %v2553_v37, %v6374_v53  ;;  %v2597_v24 = vadd.f32 %v2596_v15, %v6323_v13 }
 0x1d3   :  { %v2555_v41 = vpop.f32.mrf.mxu0  ;;  %v4326_v51 = vpop.f32.mrf.mxu1 }
 0x1d4   :  { %v2623_v17 = vrot.slane %v2554_v20, 1  ;;  %v2556_v5 = vadd.f32 %v2555_v41, %v6388_v57  ;;  %v2635_v3 = vrot.slane %v2597_v24, 3 }
 0x1d5   :  { %v2557_v56 = vpop.f32.mrf.mxu0  ;;  %v2599_v9 = vpop.f32.mrf.mxu1 }
 0x1d6   :  { %v2625_v16 = vsel %vm1366_vm11, %v2623_v17, 0.0  ;;  %v2629_v25 = vrot.slane %v2556_v5, 2  ;;  %v2558_v63 = vadd.f32 %v2557_v56, %v6402_v6  ;;  %v2600_v53 = vadd.f32 %v2599_v9, %v6327_v8 }
 0x1d7   :  { %v2627_v10 = vadd.f32 %v2625_v16, %v2621_v2  ;;  %v2559_v4 = vpop.f32.mrf.mxu0  ;;  %v4327_v13 = vpop.f32.mrf.mxu1  ;;  %v2637_v38 = vsel %vm1384_vm13, %v2635_v3, 0.0  ;;  %v3010_v2 = vunpack.c.0.s8 %v3009_v35 }
 0x1d8   :  { %v2631_v39 = vsel %vm1375_vm12, %v2629_v25, 0.0  ;;  %v2624_v18 = vrot.slane %v2558_v63, 1  ;;  %v2560_v57 = vadd.f32 %v2559_v4, %v6416_v62  ;;  %v2636_v6 = vrot.slane %v2600_v53, 3 }
 0x1d9   :  { %v2633_v7 = vadd.f32 %v2631_v39, %v2627_v10  ;;  %v6497_v24 = vsub.s32 %v3010_v2, %v6178_v32 }
 0x1da   :  { %v2626_v22 = vsel %vm1366_vm11, %v2624_v18, 0.0  ;;  %v2630_v52 = vrot.slane %v2560_v57, 2  ;;  %v2638_v62 = vsel %vm1384_vm13, %v2636_v6, 0.0 }
 0x1db   :  { %v2639_v36 = vadd.f32 %v2637_v38, %v2633_v7  ;;  %v2628_v8 = vadd.f32 %v2626_v22, %v2622_v59 }
 0x1dc   :  { %v2632_v58 = vsel %vm1375_vm12, %v2630_v52, 0.0 }
 0x1dd   :  { %v2642_v42 = vadd.f32 %v2641_v44, %v2639_v36  ;;  %v2634_v43 = vadd.f32 %v2632_v58, %v2628_v8 }
 0x1df   :  { %v4046_v19 = vmul.f32 -1.442695, %v2642_v42  ;;  %v2640_v47 = vadd.f32 %v2638_v62, %v2634_v43  ;;  %v4112_v43 = vld [vmem:[%s6537_s6 + $0x4] sm:$0xf] }
 0x1e0   :  { %v3066_v62 = vrot.slane %v4112_v43, %v6481_v28 }
 0x1e1   :  { %4805 = vpow2.f32 %v4046_v19  ;;  %v2643_v12 = vadd.f32 %v2641_v44, %v2640_v47  ;;  %v3074_v19 = vrot.slane %v4112_v43, %v6484_v49  ;;  %v3070_v47 = vrot.slane %v4112_v43, %v6487_v0 }
 0x1e3   :  { %v4047_v50 = vmul.f32 -1.442695, %v2643_v12  ;;  %v3078_v12 = vrot.slane %v4112_v43, %v6492_v61 }
 0x1e5   :  { %4807 = vpow2.f32 %v4047_v50 }
 0x1ee   :  { %v4806_v29 = vpop.eup %4805 }
 0x1ef   :  { %v2650_v23 = vadd.f32 1.0, %v4806_v29 }
 0x1f1   :  { %4809 = vrcp.f32 %v2650_v23  ;;  %v2954_v1 = vpop.f32.mrf.mxu0  ;;  %v2995_v55 = vpop.f32.mrf.mxu1 }
 0x1f2   :  { %v4808_v54 = vpop.eup %4807  ;;  %v2955_v34 = vadd.f32 %v2954_v1, %v2743_v33  ;;  %v2996_v14 = vadd.f32 %v2995_v55, %v2751_v40 }
 0x1f3   :  { %v2651_v30 = vadd.f32 1.0, %v4808_v54  ;;  %v2956_v27 = vpop.f32.mrf.mxu0  ;;  %v2997_v60 = vpop.f32.mrf.mxu1 }
 0x1f4   :  { %v2957_v45 = vadd.f32 %v2956_v27, %v2747_v48  ;;  %v2998_v59 = vadd.f32 %v2997_v60, %v2755_v46  ;;  %v4178_v27 = vld [vmem:[%s6537_s6 + $0x8] sm:$0xf] }
 0x1f5   :  { %4811 = vrcp.f32 %v2651_v30  ;;  %v2958_v37 = vpop.f32.mrf.mxu0  ;;  %v2999_v15 = vpop.f32.mrf.mxu1  ;;  %v3397_v60 = vrot.slane %v4178_v27, %v6481_v28 }
 0x1f6   :  { %v3006_v20 = vcombine.low %v2955_v34, %v2957_v45  ;;  %v3007_v41 = vcombine.low %v2996_v14, %v2998_v59  ;;  %v3405_v45 = vrot.slane %v4178_v27, %v6484_v49  ;;  %v3401_v59 = vrot.slane %v4178_v27, %v6487_v0 }
 0x1f7   :  { %v2959_v51 = vpop.f32.mrf.mxu0  ;;  %v3000_v17 = vpop.f32.mrf.mxu1  ;;  %v3409_v37 = vrot.slane %v4178_v27, %v6492_v61 }
 0x1f8   :  { %v3014_v5 = vrot.slane %v3006_v20, %v6497_v24  ;;  %v3021_v56 = vrot.slane %v3007_v41, %v6497_v24 }
 0x1fa   :  { %v3022_v9 = vcombine.low %v3014_v5, %v3021_v56 }
 0x1fc   :  { %3024 = vst [vmem:[%s6538_s7] sm:$0xff] %v3022_v9 }
 0x1fe   :  { %v4810_v16 = vpop.eup %4809 }
 0x1ff   :  { %v2688_v3 = vmul.f32 %v4810_v16, %v5391_v26 }
 0x201   :  { %v2690_v25 = vrot.slane %v2688_v3, 4 }
 0x202   :  { %v4812_v63 = vpop.eup %4811 }
 0x203   :  { %v2689_v32 = vmul.f32 %v4812_v63, %v5400_v31  ;;  %v2691_v10 = vadd.f32 %v2690_v25, %v2688_v3 }
 0x205   :  { %v2692_v53 = vrot.slane %v2691_v10, 2  ;;  %v2696_v4 = vrot.slane %v2689_v32, 4 }
 0x207   :  { %v2693_v13 = vadd.f32 %v2692_v53, %v2691_v10  ;;  %v2697_v39 = vadd.f32 %v2696_v4, %v2689_v32 }
 0x209   :  { %v2694_v18 = vrot.slane %v2693_v13, 1  ;;  %v2698_v57 = vrot.slane %v2697_v39, 2 }
 0x20b   :  { %v2695_v7 = vadd.f32 %v2694_v18, %v2693_v13  ;;  %v2699_v44 = vadd.f32 %v2698_v57, %v2697_v39 }
 0x20d   :  { %v2700_v38 = vrot.slane %v2699_v44, 1  ;;  %v2702_v22 = vmul.f32 0.125, %v2695_v7 }
 0x20f   :  { %v2701_v6 = vadd.f32 %v2700_v38, %v2699_v44  ;;  %v3356_v36 = vpack.c.bf16 %v2702_v22, %v2702_v22 }
 0x211   :  { %v2703_v52 = vmul.f32 0.125, %v2701_v6  ;;  %v3416_v26 = vunpack.c.l.b16 %v3356_v36 }
 0x213   :  { %v3357_v8 = vpack.c.bf16 %v2703_v52, %v2703_v52 }
 0x215   :  { %v3417_v58 = vunpack.c.l.b16 %v3357_v8 }
 0x217   :  { %v3418_v42 = vsel %vm1616_vm1, %v3417_v58, %v3416_v26 }
 0x218   :  { %v3419_v31 = vpack.c.b16 %v3418_v42, %v3418_v42 }
 0x21a   :  { %3614 = vmatmul.mubr.bf16.vlgmr.msra.gmra.mxu0 %v3419_v31  ;;  %3655 = vmatmul.mubr.bf16.vlgmr.msra.gmra.mxu1 %v3419_v31 }
 0x25a   :  { %v3284_v50 = vpop.f32.mrf.mxu0  ;;  %v3325_v11 = vpop.f32.mrf.mxu1 }
 0x25b   :  { %v3285_v40 = vadd.f32 %v3284_v50, %v3066_v62  ;;  %v3326_v21 = vadd.f32 %v3325_v11, %v3074_v19 }
 0x25c   :  { %v3286_v29 = vpop.f32.mrf.mxu0  ;;  %v3327_v33 = vpop.f32.mrf.mxu1 }
 0x25d   :  { %v3287_v35 = vadd.f32 %v3286_v29, %v3070_v47  ;;  %v3328_v23 = vadd.f32 %v3327_v33, %v3078_v12 }
 0x25e   :  { %v3288_v48 = vpop.f32.mrf.mxu0  ;;  %v3329_v46 = vpop.f32.mrf.mxu1 }
 0x25f   :  { %v3336_v1 = vcombine.low %v3285_v40, %v3287_v35  ;;  %v3337_v55 = vcombine.low %v3326_v21, %v3328_v23 }
 0x260   :  { %v3289_v54 = vpop.f32.mrf.mxu0  ;;  %v3330_v34 = vpop.f32.mrf.mxu1 }
 0x261   :  { %v3344_v14 = vrot.slane %v3336_v1, %v6497_v24  ;;  %v3351_v2 = vrot.slane %v3337_v55, %v6497_v24 }
 0x263   :  { %v3352_v30 = vcombine.low %v3344_v14, %v3351_v2 }
 0x265   :  { %4145 = vst [vmem:[%s6538_s7 + $0x8] sm:$0xff] %v3352_v30 }
 0x2da   :  { %v3615_v15 = vpop.f32.mrf.mxu0  ;;  %v3656_v20 = vpop.f32.mrf.mxu1 }
 0x2db   :  { %v3616_v17 = vadd.f32 %v3615_v15, %v3397_v60  ;;  %v3657_v5 = vadd.f32 %v3656_v20, %v3405_v45 }
 0x2dc   :  { %v3617_v41 = vpop.f32.mrf.mxu0  ;;  %v3658_v51 = vpop.f32.mrf.mxu1 }
 0x2dd   :  { %v3618_v56 = vadd.f32 %v3617_v41, %v3401_v59  ;;  %v3659_v9 = vadd.f32 %v3658_v51, %v3409_v37 }
 0x2de   :  { %v3619_v16 = vpop.f32.mrf.mxu0  ;;  %v3660_v3 = vpop.f32.mrf.mxu1 }
 0x2df   :  { %v3667_v25 = vcombine.low %v3616_v17, %v3618_v56  ;;  %v3668_v63 = vcombine.low %v3657_v5, %v3659_v9 }
 0x2e0   :  { %v3620_v32 = vpop.f32.mrf.mxu0  ;;  %v3661_v28 = vpop.f32.mrf.mxu1 }
 0x2e1   :  { %v3675_v49 = vrot.slane %v3667_v25, %v6497_v24  ;;  %v3682_v0 = vrot.slane %v3668_v63, %v6497_v24 }
 0x2e3   :  { %v3683_v10 = vcombine.low %v3675_v49, %v3682_v0 }
 0x2e5   :  { %4211 = vst [vmem:[%s6538_s7 + $0x10] sm:$0xff] %v3683_v10 }

</bundles_post_ra>
